<compile_context>
chip_gen: v7x
topology: tpu7x:2x2x1
jax: 0.10.0
libtpu: 0.0.40
codegen_flags: <defaults>
</compile_context>

<pallas_src>
import functools
import math

import numpy as np
import jax
import jax.numpy as jnp
from jax.experimental import pallas as pl
from jax.experimental.pallas import tpu as pltpu  # noqa: F401  (TPU backend)

EPS = 1e-5          # nn.LayerNorm default eps
NEG_INF = -1e30     # key_padding_mask fill value (exp underflows to exactly 0)


def _transformer_block_kernel(
    # activations / conditioning values
    t_ref, e_ref, x_ref, xcls_ref, mask_ref,
    # constant head-routing matrices
    hred_ref, hexp_ref,
    # conditioning params (t): GFP W, Linear (split sin/cos rows), Dense(D,1)
    wgfp_t_ref, wts_ref, wtc_ref, bemb_t_ref, wdt_ref, bdt_ref,
    # conditioning params (e)
    wgfp_e_ref, wes_ref, wec_ref, bemb_e_ref, wde_ref, bde_ref,
    # attention: q / k / v projections (bf16) + out-proj (bf16)
    wq_ref, bq_ref, wk_ref, bk_ref, wv_ref, bv_ref, wo_ref, bo_ref,
    # layer norms 1..4
    g1_ref, be1_ref, g2_ref, be2_ref, g3_ref, be3_ref, g4_ref, be4_ref,
    # ffnn (cls branch), bf16 weights
    wf1_ref, bf1_ref, wf2_ref, bf2_ref,
    # ffnn2 (seq branch), bf16 weights
    wh1_ref, bh1_ref, wh2_ref, bh2_ref,
    # output
    xout_ref,
    *, B, N, num_heads):
    D = x_ref.shape[-1]
    BN = B * N

    def mxu(a, w_ref):
        # Large matmul: bf16 operands on the MXU, f32 accumulation.
        return jnp.dot(a.astype(jnp.bfloat16), w_ref[...],
                       preferred_element_type=jnp.float32)

    def dotf(a, b):
        # Tiny routing / conditioning matmuls stay in f32 (exactness).
        return jnp.dot(a, b, preferred_element_type=jnp.float32)

    def gelu(z):  # exact (erf) GELU, PyTorch nn.GELU default
        return 0.5 * z * (1.0 + jax.lax.erf(z * (1.0 / math.sqrt(2.0))))

    def layer_norm(z, g_ref, beta_ref):
        mu = jnp.mean(z, axis=-1, keepdims=True)
        var = jnp.mean(jnp.square(z - mu), axis=-1, keepdims=True)
        return (z - mu) * jax.lax.rsqrt(var + EPS) * g_ref[...] + beta_ref[...]

    def cond_shift(val, wgfp_ref, ws_ref, wc_ref, bemb_ref, wd_ref, bd_ref):
        # GaussianFourierProjection -> Linear -> swish -> Dense(D,1): [B, 1]
        proj = val * wgfp_ref[...] * (2.0 * math.pi)                # [B, D//2]
        h = (dotf(jnp.sin(proj), ws_ref[...])
             + dotf(jnp.cos(proj), wc_ref[...]) + bemb_ref[...])    # [B, D]
        h = h * jax.nn.sigmoid(h)                                   # x * sigmoid(x)
        return dotf(h, wd_ref[...]) + bd_ref[...]                   # [B, 1]

    # ---- time / energy conditioning, computed ONCE for the whole batch ----
    shift = (cond_shift(t_ref[...], wgfp_t_ref, wts_ref, wtc_ref,
                        bemb_t_ref, wdt_ref, bdt_ref)
             + cond_shift(e_ref[...], wgfp_e_ref, wes_ref, wec_ref,
                          bemb_e_ref, wde_ref, bde_ref))            # [B, 1]
    x = (x_ref[...].reshape(B, N, D) + shift[:, :, None]).reshape(BN, D)
    xc = xcls_ref[...]                                              # [B, D] (Q == 1)

    # ---- projections (bf16 MXU inputs, f32 accumulation) ----
    q = mxu(xc, wq_ref) + bq_ref[...]                               # [B, D]
    k = mxu(x, wk_ref) + bk_ref[...]                                # [BN, D]
    v = mxu(x, wv_ref) + bv_ref[...]                                # [BN, D]

    # ---- single-query (cls) multi-head attention, no per-head loop ----
    # s[(b,n), h] = (1/sqrt(dh)) * sum_{d in head h} q[b,d] * k[(b,n),d]
    kq = (k.reshape(B, N, D) * q[:, None, :]).reshape(BN, D)        # [BN, D]
    s = dotf(kq, hred_ref[...])                                     # [BN, nh] (scale folded in)
    s = s + mask_ref[...] * NEG_INF                                 # mask: [BN, 1]
    s3 = s.reshape(B, N, num_heads)
    m = jnp.max(s3, axis=1, keepdims=True)                          # per-(batch, head) max
    p3 = jnp.exp(s3 - m)                                            # un-normalized probs
    denom = jnp.sum(p3, axis=1)                                     # [B, nh]
    # Reduce the un-normalized probs against V, normalize afterwards.
    pv = dotf(p3.reshape(BN, num_heads), hexp_ref[...]) * v         # [BN, D]
    o_un = jnp.sum(pv.reshape(B, N, D), axis=1)                     # [B, D]
    o = o_un * pl.reciprocal(dotf(denom, hexp_ref[...]), approx=True)
    attn = mxu(o, wo_ref) + bo_ref[...]                             # [B, D]

    # ---- cls-token branch ----
    n1 = layer_norm(xc + attn, g1_ref, be1_ref)
    f = gelu(mxu(n1, wf1_ref) + bf1_ref[...])
    f = mxu(f, wf2_ref) + bf2_ref[...]
    n2 = layer_norm(f + n1, g2_ref, be2_ref)                        # [B, D]

    # ---- sequence branch ----
    y = layer_norm((x.reshape(B, N, D) + n2[:, None, :]).reshape(BN, D),
                   g3_ref, be3_ref)                                 # [BN, D]
    f2 = gelu(mxu(y, wh1_ref) + bh1_ref[...])
    f2 = mxu(f2, wh2_ref) + bh2_ref[...]
    xout_ref[...] = layer_norm(y + f2, g4_ref, be4_ref)


def transformer_block_pallas(x, t, e, x_cls, key_padding_mask, original_t,
                             params, num_heads):
    """Returns [x_out, t, e, x_cls, key_padding_mask, original_t] like the module."""
    B, N, D = x.shape
    Q = x_cls.shape[1]
    assert Q == 1, "x_cls is the class token: expected shape [B, 1, D]"
    assert D % num_heads == 0
    BN = B * N
    dh = D // num_heads
    D2 = D // 2
    p = params

    # Free layout work in the wrapper (no compute): flatten batch, split the
    # conditioning weight into sin/cos halves, build the tiny head-routing
    # matrices, store the MXU-fed weights in bf16.
    x2 = x.reshape(BN, D).astype(jnp.float32)
    xc2 = x_cls.reshape(B, D).astype(jnp.float32)
    mask2 = key_padding_mask.reshape(BN, 1).astype(jnp.float32)
    t2 = t.reshape(B, 1).astype(jnp.float32)
    e2 = e.reshape(B, 1).astype(jnp.float32)

    head_id = np.arange(D) // dh
    head_expand = (np.arange(num_heads)[:, None] == head_id[None, :]
                   ).astype(np.float32)                              # [nh, D]
    head_reduce = np.ascontiguousarray(head_expand.T) / math.sqrt(dh)  # [D, nh]

    def bf16(w):
        return w.astype(jnp.bfloat16)

    weights = [
        jnp.asarray(head_reduce), jnp.asarray(head_expand),
        p["wgfp_t"], p["wemb_t"][:D2], p["wemb_t"][D2:], p["bemb_t"],
        p["wdt"], p["bdt"],
        p["wgfp_e"], p["wemb_e"][:D2], p["wemb_e"][D2:], p["bemb_e"],
        p["wde"], p["bde"],
        bf16(p["wq"]), p["bq"], bf16(p["wk"]), p["bk"],
        bf16(p["wv"]), p["bv"], bf16(p["wo"]), p["bo"],
        p["g1"], p["be1"], p["g2"], p["be2"], p["g3"], p["be3"], p["g4"], p["be4"],
        bf16(p["wf1"]), p["bf1"], bf16(p["wf2"]), p["bf2"],
        bf16(p["wh1"]), p["bh1"], bf16(p["wh2"]), p["bh2"],
    ]

    kernel = functools.partial(_transformer_block_kernel,
                               B=B, N=N, num_heads=num_heads)

    # Single invocation (no grid): every operand is a full-array VMEM block,
    # so weights are not double-buffered and there is no per-step overhead.
    x_out2 = pl.pallas_call(
        kernel,
        out_shape=jax.ShapeDtypeStruct((BN, D), jnp.float32),
    )(t2, e2, x2, xc2, mask2, *weights)

    return [x_out2.reshape(B, N, D), t, e, x_cls, key_padding_mask, original_t]


# ----------------------------- reference (plain JAX, f32) -----------------------------
def transformer_block_reference(x, t, e, x_cls, key_padding_mask, params, num_heads):
    B, N, D = x.shape
    Q = x_cls.shape[1]
    D2 = D // 2
    dh = D // num_heads
    p = params

    def gelu(z):
        return 0.5 * z * (1.0 + jax.lax.erf(z / math.sqrt(2.0)))

    def ln(z, g, b_):
        mu = jnp.mean(z, -1, keepdims=True)
        var = jnp.mean(jnp.square(z - mu), -1, keepdims=True)
        return (z - mu) * jax.lax.rsqrt(var + EPS) * g + b_

    def cond(val, wg, we, be_, wd, bd):
        proj = val[:, None] * wg.reshape(1, D2) * (2.0 * math.pi)
        feat = jnp.concatenate([jnp.sin(proj), jnp.cos(proj)], axis=-1)
        h = feat @ we + be_
        h = h * jax.nn.sigmoid(h)
        s = h @ wd + bd                   # [B, 1]
        return s[:, :, None]              # [B, 1, 1]

    x = x + cond(t, p["wgfp_t"], p["wemb_t"], p["bemb_t"], p["wdt"], p["bdt"])
    x = x + cond(e, p["wgfp_e"], p["wemb_e"], p["bemb_e"], p["wde"], p["bde"])

    q = x_cls @ p["wq"] + p["bq"]
    k = x @ p["wk"] + p["bk"]
    v = x @ p["wv"] + p["bv"]
    qh = q.reshape(B, Q, num_heads, dh).transpose(0, 2, 1, 3)
    kh = k.reshape(B, N, num_heads, dh).transpose(0, 2, 1, 3)
    vh = v.reshape(B, N, num_heads, dh).transpose(0, 2, 1, 3)
    sc = jnp.einsum("bhqd,bhkd->bhqk", qh, kh) / math.sqrt(dh)
    sc = sc + (key_padding_mask.astype(jnp.float32) * NEG_INF)[:, None, None, :]
    pr = jax.nn.softmax(sc, axis=-1)
    o = jnp.einsum("bhqk,bhkd->bhqd", pr, vh).transpose(0, 2, 1, 3).reshape(B, Q, D)
    attn_out = o @ p["wo"] + p["bo"]

    attn_res = x_cls + attn_out
    n1 = ln(attn_res, p["g1"], p["be1"])
    f = gelu(n1 @ p["wf1"] + p["bf1"]) @ p["wf2"] + p["bf2"]
    n2 = ln(f + n1, p["g2"], p["be2"])
    x = x + n2
    x = ln(x, p["g3"], p["be3"])
    f2 = gelu(x @ p["wh1"] + p["bh1"]) @ p["wh2"] + p["bh2"]
    x = x + f2
    x = ln(x, p["g4"], p["be4"])
    return x


def make_params(key, embed_dim, hidden_dim):
    D, H = embed_dim, hidden_dim
    D2 = D // 2
    keys = iter(jax.random.split(key, 64))

    def w(shape, scale=0.1):
        return jax.random.normal(next(keys), shape, jnp.float32) * scale

    params = dict(
        wgfp_t=w((1, D2), 30.0), wemb_t=w((D, D)), bemb_t=w((1, D)),
        wdt=w((D, 1)), bdt=w((1, 1)),
        wgfp_e=w((1, D2), 30.0), wemb_e=w((D, D)), bemb_e=w((1, D)),
        wde=w((D, 1)), bde=w((1, 1)),
        wq=w((D, D)), bq=w((1, D)), wk=w((D, D)), bk=w((1, D)),
        wv=w((D, D)), bv=w((1, D)), wo=w((D, D)), bo=w((1, D)),
        g1=1.0 + w((1, D), 0.05), be1=w((1, D)),
        g2=1.0 + w((1, D), 0.05), be2=w((1, D)),
        g3=1.0 + w((1, D), 0.05), be3=w((1, D)),
        g4=1.0 + w((1, D), 0.05), be4=w((1, D)),
        wf1=w((D, H)), bf1=w((1, H)), wf2=w((H, D)), bf2=w((1, D)),
        wh1=w((D, H)), bh1=w((1, H)), wh2=w((H, D)), bh2=w((1, D)),
    )
    return params


if __name__ == "__main__":
    B, N, Q = 2, 8, 1            # batch, sequence length, cls tokens
    D, H, num_heads = 32, 64, 4  # embed_dim, hidden_dim, heads

    key = jax.random.PRNGKey(0)
    k_x, k_t, k_e, k_cls, k_p = jax.random.split(key, 5)
    x = jax.random.normal(k_x, (B, N, D), jnp.float32)
    t = jax.random.uniform(k_t, (B,), jnp.float32)
    e = jax.random.uniform(k_e, (B,), jnp.float32)
    x_cls = jax.random.normal(k_cls, (B, Q, D), jnp.float32)
    # key_padding_mask: True => that key position is ignored in attention
    src_key_padding_mask = jnp.zeros((B, N), jnp.bool_).at[1, N - 2:].set(True)
    original_t = t

    params = make_params(k_p, D, H)

    out = transformer_block_pallas(x, t, e, x_cls, src_key_padding_mask,
                                   original_t, params, num_heads)
    x_out = jax.block_until_ready(out[0])

    ref = transformer_block_reference(x, t, e, x_cls, src_key_padding_mask,
                                      params, num_heads)
    # Tolerance reflects bf16 MXU operands (f32 accumulation) in the kernel
    # vs. the all-f32 reference.
    np.testing.assert_allclose(np.asarray(x_out), np.asarray(ref),
                               rtol=3e-2, atol=3e-2)
    print("KERNEL_OK")
</pallas_src>

<mosaic_0001>
module attributes {stable_mosaic.version = 11 : i64} {
  func.func @_transformer_block_kernel(%arg0: memref<2x1xf32, #tpu.memory_space<vmem>>, %arg1: memref<2x1xf32, #tpu.memory_space<vmem>>, %arg2: memref<16x32xf32, #tpu.memory_space<vmem>>, %arg3: memref<2x32xf32, #tpu.memory_space<vmem>>, %arg4: memref<16x1xf32, #tpu.memory_space<vmem>>, %arg5: memref<32x4xf32, #tpu.memory_space<vmem>>, %arg6: memref<4x32xf32, #tpu.memory_space<vmem>>, %arg7: memref<1x16xf32, #tpu.memory_space<vmem>>, %arg8: memref<16x32xf32, #tpu.memory_space<vmem>>, %arg9: memref<16x32xf32, #tpu.memory_space<vmem>>, %arg10: memref<1x32xf32, #tpu.memory_space<vmem>>, %arg11: memref<32x1xf32, #tpu.memory_space<vmem>>, %arg12: memref<1x1xf32, #tpu.memory_space<vmem>>, %arg13: memref<1x16xf32, #tpu.memory_space<vmem>>, %arg14: memref<16x32xf32, #tpu.memory_space<vmem>>, %arg15: memref<16x32xf32, #tpu.memory_space<vmem>>, %arg16: memref<1x32xf32, #tpu.memory_space<vmem>>, %arg17: memref<32x1xf32, #tpu.memory_space<vmem>>, %arg18: memref<1x1xf32, #tpu.memory_space<vmem>>, %arg19: memref<32x32xbf16, #tpu.memory_space<vmem>>, %arg20: memref<1x32xf32, #tpu.memory_space<vmem>>, %arg21: memref<32x32xbf16, #tpu.memory_space<vmem>>, %arg22: memref<1x32xf32, #tpu.memory_space<vmem>>, %arg23: memref<32x32xbf16, #tpu.memory_space<vmem>>, %arg24: memref<1x32xf32, #tpu.memory_space<vmem>>, %arg25: memref<32x32xbf16, #tpu.memory_space<vmem>>, %arg26: memref<1x32xf32, #tpu.memory_space<vmem>>, %arg27: memref<1x32xf32, #tpu.memory_space<vmem>>, %arg28: memref<1x32xf32, #tpu.memory_space<vmem>>, %arg29: memref<1x32xf32, #tpu.memory_space<vmem>>, %arg30: memref<1x32xf32, #tpu.memory_space<vmem>>, %arg31: memref<1x32xf32, #tpu.memory_space<vmem>>, %arg32: memref<1x32xf32, #tpu.memory_space<vmem>>, %arg33: memref<1x32xf32, #tpu.memory_space<vmem>>, %arg34: memref<1x32xf32, #tpu.memory_space<vmem>>, %arg35: memref<32x64xbf16, #tpu.memory_space<vmem>>, %arg36: memref<1x64xf32, #tpu.memory_space<vmem>>, %arg37: memref<64x32xbf16, #tpu.memory_space<vmem>>, %arg38: memref<1x32xf32, #tpu.memory_space<vmem>>, %arg39: memref<32x64xbf16, #tpu.memory_space<vmem>>, %arg40: memref<1x64xf32, #tpu.memory_space<vmem>>, %arg41: memref<64x32xbf16, #tpu.memory_space<vmem>>, %arg42: memref<1x32xf32, #tpu.memory_space<vmem>>, %arg43: memref<16x32xf32, #tpu.memory_space<vmem>>) attributes {dimension_semantics = [], scalar_prefetch = 0 : i64, scratch_operands = 0 : i64, tpu.core_type = #tpu.core_type<tc>} {
    %c0 = arith.constant 0 : index
    %c0_0 = arith.constant 0 : index
    %0 = vector.load %arg0[%c0, %c0_0] : memref<2x1xf32, #tpu.memory_space<vmem>>, vector<2x1xf32>
    %c0_1 = arith.constant 0 : index
    %c0_2 = arith.constant 0 : index
    %1 = vector.load %arg7[%c0_1, %c0_2] : memref<1x16xf32, #tpu.memory_space<vmem>>, vector<1x16xf32>
    %2 = vector.broadcast %0 : vector<2x1xf32> to vector<2x16xf32>
    %3 = vector.broadcast %1 : vector<1x16xf32> to vector<2x16xf32>
    %4 = arith.mulf %2, %3 : vector<2x16xf32>
    %cst = arith.constant 6.28318548 : f32
    %5 = vector.broadcast %cst : f32 to vector<2x16xf32>
    %6 = arith.mulf %4, %5 : vector<2x16xf32>
    %7 = math.sin %6 : vector<2x16xf32>
    %c0_3 = arith.constant 0 : index
    %c0_4 = arith.constant 0 : index
    %8 = vector.load %arg8[%c0_3, %c0_4] : memref<16x32xf32, #tpu.memory_space<vmem>>, vector<16x32xf32>
    %cst_5 = arith.constant dense<0.000000e+00> : vector<2x32xf32>
    %9 = tpu.matmul %7, %8, %cst_5 {dimension_numbers = #tpu.dot_dimension_numbers<[1], [0], [0], [1], [0, 0, 1, 1], [], []>} : vector<2x16xf32>, vector<16x32xf32>, vector<2x32xf32> -> vector<2x32xf32>
    %10 = math.cos %6 : vector<2x16xf32>
    %c0_6 = arith.constant 0 : index
    %c0_7 = arith.constant 0 : index
    %11 = vector.load %arg9[%c0_6, %c0_7] : memref<16x32xf32, #tpu.memory_space<vmem>>, vector<16x32xf32>
    %cst_8 = arith.constant dense<0.000000e+00> : vector<2x32xf32>
    %12 = tpu.matmul %10, %11, %cst_8 {dimension_numbers = #tpu.dot_dimension_numbers<[1], [0], [0], [1], [0, 0, 1, 1], [], []>} : vector<2x16xf32>, vector<16x32xf32>, vector<2x32xf32> -> vector<2x32xf32>
    %13 = arith.addf %9, %12 : vector<2x32xf32>
    %c0_9 = arith.constant 0 : index
    %c0_10 = arith.constant 0 : index
    %14 = vector.load %arg10[%c0_9, %c0_10] : memref<1x32xf32, #tpu.memory_space<vmem>>, vector<1x32xf32>
    %15 = vector.broadcast %14 : vector<1x32xf32> to vector<2x32xf32>
    %16 = arith.addf %13, %15 : vector<2x32xf32>
    %17 = arith.negf %16 : vector<2x32xf32>
    %18 = math.exp %17 : vector<2x32xf32>
    %cst_11 = arith.constant 1.000000e+00 : f32
    %19 = vector.broadcast %cst_11 : f32 to vector<2x32xf32>
    %20 = arith.addf %19, %18 : vector<2x32xf32>
    %21 = arith.divf %19, %20 : vector<2x32xf32>
    %22 = arith.mulf %16, %21 : vector<2x32xf32>
    %c0_12 = arith.constant 0 : index
    %c0_13 = arith.constant 0 : index
    %23 = vector.load %arg11[%c0_12, %c0_13] : memref<32x1xf32, #tpu.memory_space<vmem>>, vector<32x1xf32>
    %cst_14 = arith.constant dense<0.000000e+00> : vector<2x1xf32>
    %24 = tpu.matmul %22, %23, %cst_14 {dimension_numbers = #tpu.dot_dimension_numbers<[1], [0], [0], [1], [0, 0, 1, 1], [], []>} : vector<2x32xf32>, vector<32x1xf32>, vector<2x1xf32> -> vector<2x1xf32>
    %c0_15 = arith.constant 0 : index
    %c0_16 = arith.constant 0 : index
    %25 = vector.load %arg12[%c0_15, %c0_16] : memref<1x1xf32, #tpu.memory_space<vmem>>, vector<1x1xf32>
    %26 = vector.broadcast %25 : vector<1x1xf32> to vector<2x1xf32>
    %27 = arith.addf %24, %26 : vector<2x1xf32>
    %c0_17 = arith.constant 0 : index
    %c0_18 = arith.constant 0 : index
    %28 = vector.load %arg1[%c0_17, %c0_18] : memref<2x1xf32, #tpu.memory_space<vmem>>, vector<2x1xf32>
    %c0_19 = arith.constant 0 : index
    %c0_20 = arith.constant 0 : index
    %29 = vector.load %arg13[%c0_19, %c0_20] : memref<1x16xf32, #tpu.memory_space<vmem>>, vector<1x16xf32>
    %30 = vector.broadcast %28 : vector<2x1xf32> to vector<2x16xf32>
    %31 = vector.broadcast %29 : vector<1x16xf32> to vector<2x16xf32>
    %32 = arith.mulf %30, %31 : vector<2x16xf32>
    %cst_21 = arith.constant 6.28318548 : f32
    %33 = vector.broadcast %cst_21 : f32 to vector<2x16xf32>
    %34 = arith.mulf %32, %33 : vector<2x16xf32>
    %35 = math.sin %34 : vector<2x16xf32>
    %c0_22 = arith.constant 0 : index
    %c0_23 = arith.constant 0 : index
    %36 = vector.load %arg14[%c0_22, %c0_23] : memref<16x32xf32, #tpu.memory_space<vmem>>, vector<16x32xf32>
    %cst_24 = arith.constant dense<0.000000e+00> : vector<2x32xf32>
    %37 = tpu.matmul %35, %36, %cst_24 {dimension_numbers = #tpu.dot_dimension_numbers<[1], [0], [0], [1], [0, 0, 1, 1], [], []>} : vector<2x16xf32>, vector<16x32xf32>, vector<2x32xf32> -> vector<2x32xf32>
    %38 = math.cos %34 : vector<2x16xf32>
    %c0_25 = arith.constant 0 : index
    %c0_26 = arith.constant 0 : index
    %39 = vector.load %arg15[%c0_25, %c0_26] : memref<16x32xf32, #tpu.memory_space<vmem>>, vector<16x32xf32>
    %cst_27 = arith.constant dense<0.000000e+00> : vector<2x32xf32>
    %40 = tpu.matmul %38, %39, %cst_27 {dimension_numbers = #tpu.dot_dimension_numbers<[1], [0], [0], [1], [0, 0, 1, 1], [], []>} : vector<2x16xf32>, vector<16x32xf32>, vector<2x32xf32> -> vector<2x32xf32>
    %41 = arith.addf %37, %40 : vector<2x32xf32>
    %c0_28 = arith.constant 0 : index
    %c0_29 = arith.constant 0 : index
    %42 = vector.load %arg16[%c0_28, %c0_29] : memref<1x32xf32, #tpu.memory_space<vmem>>, vector<1x32xf32>
    %43 = vector.broadcast %42 : vector<1x32xf32> to vector<2x32xf32>
    %44 = arith.addf %41, %43 : vector<2x32xf32>
    %45 = arith.negf %44 : vector<2x32xf32>
    %46 = math.exp %45 : vector<2x32xf32>
    %cst_30 = arith.constant 1.000000e+00 : f32
    %47 = vector.broadcast %cst_30 : f32 to vector<2x32xf32>
    %48 = arith.addf %47, %46 : vector<2x32xf32>
    %49 = arith.divf %47, %48 : vector<2x32xf32>
    %50 = arith.mulf %44, %49 : vector<2x32xf32>
    %c0_31 = arith.constant 0 : index
    %c0_32 = arith.constant 0 : index
    %51 = vector.load %arg17[%c0_31, %c0_32] : memref<32x1xf32, #tpu.memory_space<vmem>>, vector<32x1xf32>
    %cst_33 = arith.constant dense<0.000000e+00> : vector<2x1xf32>
    %52 = tpu.matmul %50, %51, %cst_33 {dimension_numbers = #tpu.dot_dimension_numbers<[1], [0], [0], [1], [0, 0, 1, 1], [], []>} : vector<2x32xf32>, vector<32x1xf32>, vector<2x1xf32> -> vector<2x1xf32>
    %c0_34 = arith.constant 0 : index
    %c0_35 = arith.constant 0 : index
    %53 = vector.load %arg18[%c0_34, %c0_35] : memref<1x1xf32, #tpu.memory_space<vmem>>, vector<1x1xf32>
    %54 = vector.broadcast %53 : vector<1x1xf32> to vector<2x1xf32>
    %55 = arith.addf %52, %54 : vector<2x1xf32>
    %56 = arith.addf %27, %55 : vector<2x1xf32>
    %c0_36 = arith.constant 0 : index
    %c0_37 = arith.constant 0 : index
    %57 = vector.load %arg2[%c0_36, %c0_37] : memref<16x32xf32, #tpu.memory_space<vmem>>, vector<16x32xf32>
    %58 = vector.shape_cast %57 : vector<16x32xf32> to vector<2x8x32xf32>
    %59 = vector.shape_cast %56 : vector<2x1xf32> to vector<2x1x1xf32>
    %60 = vector.broadcast %59 : vector<2x1x1xf32> to vector<2x8x32xf32>
    %61 = arith.addf %58, %60 : vector<2x8x32xf32>
    %62 = vector.shape_cast %61 : vector<2x8x32xf32> to vector<16x32xf32>
    %c0_38 = arith.constant 0 : index
    %c0_39 = arith.constant 0 : index
    %63 = vector.load %arg3[%c0_38, %c0_39] : memref<2x32xf32, #tpu.memory_space<vmem>>, vector<2x32xf32>
    %64 = arith.truncf %63 : vector<2x32xf32> to vector<2x32xbf16>
    %c0_40 = arith.constant 0 : index
    %c0_41 = arith.constant 0 : index
    %65 = vector.load %arg19[%c0_40, %c0_41] : memref<32x32xbf16, #tpu.memory_space<vmem>>, vector<32x32xbf16>
    %cst_42 = arith.constant dense<0.000000e+00> : vector<2x32xf32>
    %66 = tpu.matmul %64, %65, %cst_42 {dimension_numbers = #tpu.dot_dimension_numbers<[1], [0], [0], [1], [0, 0, 1, 1], [], []>} : vector<2x32xbf16>, vector<32x32xbf16>, vector<2x32xf32> -> vector<2x32xf32>
    %c0_43 = arith.constant 0 : index
    %c0_44 = arith.constant 0 : index
    %67 = vector.load %arg20[%c0_43, %c0_44] : memref<1x32xf32, #tpu.memory_space<vmem>>, vector<1x32xf32>
    %68 = vector.broadcast %67 : vector<1x32xf32> to vector<2x32xf32>
    %69 = arith.addf %66, %68 : vector<2x32xf32>
    %70 = arith.truncf %62 : vector<16x32xf32> to vector<16x32xbf16>
    %c0_45 = arith.constant 0 : index
    %c0_46 = arith.constant 0 : index
    %71 = vector.load %arg21[%c0_45, %c0_46] : memref<32x32xbf16, #tpu.memory_space<vmem>>, vector<32x32xbf16>
    %cst_47 = arith.constant dense<0.000000e+00> : vector<16x32xf32>
    %72 = tpu.matmul %70, %71, %cst_47 {dimension_numbers = #tpu.dot_dimension_numbers<[1], [0], [0], [1], [0, 0, 1, 1], [], []>} : vector<16x32xbf16>, vector<32x32xbf16>, vector<16x32xf32> -> vector<16x32xf32>
    %c0_48 = arith.constant 0 : index
    %c0_49 = arith.constant 0 : index
    %73 = vector.load %arg22[%c0_48, %c0_49] : memref<1x32xf32, #tpu.memory_space<vmem>>, vector<1x32xf32>
    %74 = vector.broadcast %73 : vector<1x32xf32> to vector<16x32xf32>
    %75 = arith.addf %72, %74 : vector<16x32xf32>
    %76 = arith.truncf %62 : vector<16x32xf32> to vector<16x32xbf16>
    %c0_50 = arith.constant 0 : index
    %c0_51 = arith.constant 0 : index
    %77 = vector.load %arg23[%c0_50, %c0_51] : memref<32x32xbf16, #tpu.memory_space<vmem>>, vector<32x32xbf16>
    %cst_52 = arith.constant dense<0.000000e+00> : vector<16x32xf32>
    %78 = tpu.matmul %76, %77, %cst_52 {dimension_numbers = #tpu.dot_dimension_numbers<[1], [0], [0], [1], [0, 0, 1, 1], [], []>} : vector<16x32xbf16>, vector<32x32xbf16>, vector<16x32xf32> -> vector<16x32xf32>
    %c0_53 = arith.constant 0 : index
    %c0_54 = arith.constant 0 : index
    %79 = vector.load %arg24[%c0_53, %c0_54] : memref<1x32xf32, #tpu.memory_space<vmem>>, vector<1x32xf32>
    %80 = vector.broadcast %79 : vector<1x32xf32> to vector<16x32xf32>
    %81 = arith.addf %78, %80 : vector<16x32xf32>
    %82 = vector.shape_cast %75 : vector<16x32xf32> to vector<2x8x32xf32>
    %83 = vector.shape_cast %69 : vector<2x32xf32> to vector<2x1x32xf32>
    %84 = vector.broadcast %83 : vector<2x1x32xf32> to vector<2x8x32xf32>
    %85 = arith.mulf %82, %84 : vector<2x8x32xf32>
    %86 = vector.shape_cast %85 : vector<2x8x32xf32> to vector<16x32xf32>
    %c0_55 = arith.constant 0 : index
    %c0_56 = arith.constant 0 : index
    %87 = vector.load %arg5[%c0_55, %c0_56] : memref<32x4xf32, #tpu.memory_space<vmem>>, vector<32x4xf32>
    %cst_57 = arith.constant dense<0.000000e+00> : vector<16x4xf32>
    %88 = tpu.matmul %86, %87, %cst_57 {dimension_numbers = #tpu.dot_dimension_numbers<[1], [0], [0], [1], [0, 0, 1, 1], [], []>} : vector<16x32xf32>, vector<32x4xf32>, vector<16x4xf32> -> vector<16x4xf32>
    %c0_58 = arith.constant 0 : index
    %c0_59 = arith.constant 0 : index
    %89 = vector.load %arg4[%c0_58, %c0_59] : memref<16x1xf32, #tpu.memory_space<vmem>>, vector<16x1xf32>
    %cst_60 = arith.constant -1.000000e+30 : f32
    %90 = vector.broadcast %cst_60 : f32 to vector<16x1xf32>
    %91 = arith.mulf %89, %90 : vector<16x1xf32>
    %92 = vector.broadcast %91 : vector<16x1xf32> to vector<16x4xf32>
    %93 = arith.addf %88, %92 : vector<16x4xf32>
    %94 = vector.shape_cast %93 : vector<16x4xf32> to vector<2x8x4xf32>
    %cst_61 = arith.constant dense<0xFF800000> : vector<2x4xf32>
    %95 = vector.multi_reduction <maximumf>, %94, %cst_61 [1] : vector<2x8x4xf32> to vector<2x4xf32>
    %96 = vector.shape_cast %95 : vector<2x4xf32> to vector<2x1x4xf32>
    %97 = vector.broadcast %96 : vector<2x1x4xf32> to vector<2x8x4xf32>
    %98 = arith.subf %94, %97 : vector<2x8x4xf32>
    %99 = math.exp %98 : vector<2x8x4xf32>
    %cst_62 = arith.constant dense<0.000000e+00> : vector<2x4xf32>
    %100 = vector.multi_reduction <add>, %99, %cst_62 [1] : vector<2x8x4xf32> to vector<2x4xf32>
    %101 = vector.shape_cast %99 : vector<2x8x4xf32> to vector<16x4xf32>
    %c0_63 = arith.constant 0 : index
    %c0_64 = arith.constant 0 : index
    %102 = vector.load %arg6[%c0_63, %c0_64] : memref<4x32xf32, #tpu.memory_space<vmem>>, vector<4x32xf32>
    %cst_65 = arith.constant dense<0.000000e+00> : vector<16x32xf32>
    %103 = tpu.matmul %101, %102, %cst_65 {dimension_numbers = #tpu.dot_dimension_numbers<[1], [0], [0], [1], [0, 0, 1, 1], [], []>} : vector<16x4xf32>, vector<4x32xf32>, vector<16x32xf32> -> vector<16x32xf32>
    %104 = arith.mulf %103, %81 : vector<16x32xf32>
    %105 = vector.shape_cast %104 : vector<16x32xf32> to vector<2x8x32xf32>
    %cst_66 = arith.constant dense<0.000000e+00> : vector<2x32xf32>
    %106 = vector.multi_reduction <add>, %105, %cst_66 [1] : vector<2x8x32xf32> to vector<2x32xf32>
    %c0_67 = arith.constant 0 : index
    %c0_68 = arith.constant 0 : index
    %107 = vector.load %arg6[%c0_67, %c0_68] : memref<4x32xf32, #tpu.memory_space<vmem>>, vector<4x32xf32>
    %cst_69 = arith.constant dense<0.000000e+00> : vector<2x32xf32>
    %108 = tpu.matmul %100, %107, %cst_69 {dimension_numbers = #tpu.dot_dimension_numbers<[1], [0], [0], [1], [0, 0, 1, 1], [], []>} : vector<2x4xf32>, vector<4x32xf32>, vector<2x32xf32> -> vector<2x32xf32>
    %109 = tpu.reciprocal %108 {approx = true} : vector<2x32xf32> -> vector<2x32xf32>
    %110 = arith.mulf %106, %109 : vector<2x32xf32>
    %111 = arith.truncf %110 : vector<2x32xf32> to vector<2x32xbf16>
    %c0_70 = arith.constant 0 : index
    %c0_71 = arith.constant 0 : index
    %112 = vector.load %arg25[%c0_70, %c0_71] : memref<32x32xbf16, #tpu.memory_space<vmem>>, vector<32x32xbf16>
    %cst_72 = arith.constant dense<0.000000e+00> : vector<2x32xf32>
    %113 = tpu.matmul %111, %112, %cst_72 {dimension_numbers = #tpu.dot_dimension_numbers<[1], [0], [0], [1], [0, 0, 1, 1], [], []>} : vector<2x32xbf16>, vector<32x32xbf16>, vector<2x32xf32> -> vector<2x32xf32>
    %c0_73 = arith.constant 0 : index
    %c0_74 = arith.constant 0 : index
    %114 = vector.load %arg26[%c0_73, %c0_74] : memref<1x32xf32, #tpu.memory_space<vmem>>, vector<1x32xf32>
    %115 = vector.broadcast %114 : vector<1x32xf32> to vector<2x32xf32>
    %116 = arith.addf %113, %115 : vector<2x32xf32>
    %117 = arith.addf %63, %116 : vector<2x32xf32>
    %cst_75 = arith.constant dense<0.000000e+00> : vector<2xf32>
    %118 = vector.multi_reduction <add>, %117, %cst_75 [1] : vector<2x32xf32> to vector<2xf32>
    %119 = vector.shape_cast %118 : vector<2xf32> to vector<2x1xf32>
    %cst_76 = arith.constant 3.200000e+01 : f32
    %120 = vector.broadcast %cst_76 : f32 to vector<2x1xf32>
    %121 = arith.divf %119, %120 : vector<2x1xf32>
    %122 = vector.broadcast %121 : vector<2x1xf32> to vector<2x32xf32>
    %123 = arith.subf %117, %122 : vector<2x32xf32>
    %124 = arith.mulf %123, %123 : vector<2x32xf32>
    %cst_77 = arith.constant dense<0.000000e+00> : vector<2xf32>
    %125 = vector.multi_reduction <add>, %124, %cst_77 [1] : vector<2x32xf32> to vector<2xf32>
    %126 = vector.shape_cast %125 : vector<2xf32> to vector<2x1xf32>
    %cst_78 = arith.constant 3.200000e+01 : f32
    %127 = vector.broadcast %cst_78 : f32 to vector<2x1xf32>
    %128 = arith.divf %126, %127 : vector<2x1xf32>
    %129 = vector.broadcast %121 : vector<2x1xf32> to vector<2x32xf32>
    %130 = arith.subf %117, %129 : vector<2x32xf32>
    %cst_79 = arith.constant 9.99999974E-6 : f32
    %131 = vector.broadcast %cst_79 : f32 to vector<2x1xf32>
    %132 = arith.addf %128, %131 : vector<2x1xf32>
    %133 = math.rsqrt %132 : vector<2x1xf32>
    %134 = vector.broadcast %133 : vector<2x1xf32> to vector<2x32xf32>
    %135 = arith.mulf %130, %134 : vector<2x32xf32>
    %c0_80 = arith.constant 0 : index
    %c0_81 = arith.constant 0 : index
    %136 = vector.load %arg27[%c0_80, %c0_81] : memref<1x32xf32, #tpu.memory_space<vmem>>, vector<1x32xf32>
    %137 = vector.broadcast %136 : vector<1x32xf32> to vector<2x32xf32>
    %138 = arith.mulf %135, %137 : vector<2x32xf32>
    %c0_82 = arith.constant 0 : index
    %c0_83 = arith.constant 0 : index
    %139 = vector.load %arg28[%c0_82, %c0_83] : memref<1x32xf32, #tpu.memory_space<vmem>>, vector<1x32xf32>
    %140 = vector.broadcast %139 : vector<1x32xf32> to vector<2x32xf32>
    %141 = arith.addf %138, %140 : vector<2x32xf32>
    %142 = arith.truncf %141 : vector<2x32xf32> to vector<2x32xbf16>
    %c0_84 = arith.constant 0 : index
    %c0_85 = arith.constant 0 : index
    %143 = vector.load %arg35[%c0_84, %c0_85] : memref<32x64xbf16, #tpu.memory_space<vmem>>, vector<32x64xbf16>
    %cst_86 = arith.constant dense<0.000000e+00> : vector<2x64xf32>
    %144 = tpu.matmul %142, %143, %cst_86 {dimension_numbers = #tpu.dot_dimension_numbers<[1], [0], [0], [1], [0, 0, 1, 1], [], []>} : vector<2x32xbf16>, vector<32x64xbf16>, vector<2x64xf32> -> vector<2x64xf32>
    %c0_87 = arith.constant 0 : index
    %c0_88 = arith.constant 0 : index
    %145 = vector.load %arg36[%c0_87, %c0_88] : memref<1x64xf32, #tpu.memory_space<vmem>>, vector<1x64xf32>
    %146 = vector.broadcast %145 : vector<1x64xf32> to vector<2x64xf32>
    %147 = arith.addf %144, %146 : vector<2x64xf32>
    %cst_89 = arith.constant 5.000000e-01 : f32
    %148 = vector.broadcast %cst_89 : f32 to vector<2x64xf32>
    %149 = arith.mulf %148, %147 : vector<2x64xf32>
    %cst_90 = arith.constant 0.707106769 : f32
    %150 = vector.broadcast %cst_90 : f32 to vector<2x64xf32>
    %151 = arith.mulf %147, %150 : vector<2x64xf32>
    %152 = math.erf %151 : vector<2x64xf32>
    %cst_91 = arith.constant 1.000000e+00 : f32
    %153 = vector.broadcast %cst_91 : f32 to vector<2x64xf32>
    %154 = arith.addf %153, %152 : vector<2x64xf32>
    %155 = arith.mulf %149, %154 : vector<2x64xf32>
    %156 = arith.truncf %155 : vector<2x64xf32> to vector<2x64xbf16>
    %c0_92 = arith.constant 0 : index
    %c0_93 = arith.constant 0 : index
    %157 = vector.load %arg37[%c0_92, %c0_93] : memref<64x32xbf16, #tpu.memory_space<vmem>>, vector<64x32xbf16>
    %cst_94 = arith.constant dense<0.000000e+00> : vector<2x32xf32>
    %158 = tpu.matmul %156, %157, %cst_94 {dimension_numbers = #tpu.dot_dimension_numbers<[1], [0], [0], [1], [0, 0, 1, 1], [], []>} : vector<2x64xbf16>, vector<64x32xbf16>, vector<2x32xf32> -> vector<2x32xf32>
    %c0_95 = arith.constant 0 : index
    %c0_96 = arith.constant 0 : index
    %159 = vector.load %arg38[%c0_95, %c0_96] : memref<1x32xf32, #tpu.memory_space<vmem>>, vector<1x32xf32>
    %160 = vector.broadcast %159 : vector<1x32xf32> to vector<2x32xf32>
    %161 = arith.addf %158, %160 : vector<2x32xf32>
    %162 = arith.addf %161, %141 : vector<2x32xf32>
    %cst_97 = arith.constant dense<0.000000e+00> : vector<2xf32>
    %163 = vector.multi_reduction <add>, %162, %cst_97 [1] : vector<2x32xf32> to vector<2xf32>
    %164 = vector.shape_cast %163 : vector<2xf32> to vector<2x1xf32>
    %cst_98 = arith.constant 3.200000e+01 : f32
    %165 = vector.broadcast %cst_98 : f32 to vector<2x1xf32>
    %166 = arith.divf %164, %165 : vector<2x1xf32>
    %167 = vector.broadcast %166 : vector<2x1xf32> to vector<2x32xf32>
    %168 = arith.subf %162, %167 : vector<2x32xf32>
    %169 = arith.mulf %168, %168 : vector<2x32xf32>
    %cst_99 = arith.constant dense<0.000000e+00> : vector<2xf32>
    %170 = vector.multi_reduction <add>, %169, %cst_99 [1] : vector<2x32xf32> to vector<2xf32>
    %171 = vector.shape_cast %170 : vector<2xf32> to vector<2x1xf32>
    %cst_100 = arith.constant 3.200000e+01 : f32
    %172 = vector.broadcast %cst_100 : f32 to vector<2x1xf32>
    %173 = arith.divf %171, %172 : vector<2x1xf32>
    %174 = vector.broadcast %166 : vector<2x1xf32> to vector<2x32xf32>
    %175 = arith.subf %162, %174 : vector<2x32xf32>
    %cst_101 = arith.constant 9.99999974E-6 : f32
    %176 = vector.broadcast %cst_101 : f32 to vector<2x1xf32>
    %177 = arith.addf %173, %176 : vector<2x1xf32>
    %178 = math.rsqrt %177 : vector<2x1xf32>
    %179 = vector.broadcast %178 : vector<2x1xf32> to vector<2x32xf32>
    %180 = arith.mulf %175, %179 : vector<2x32xf32>
    %c0_102 = arith.constant 0 : index
    %c0_103 = arith.constant 0 : index
    %181 = vector.load %arg29[%c0_102, %c0_103] : memref<1x32xf32, #tpu.memory_space<vmem>>, vector<1x32xf32>
    %182 = vector.broadcast %181 : vector<1x32xf32> to vector<2x32xf32>
    %183 = arith.mulf %180, %182 : vector<2x32xf32>
    %c0_104 = arith.constant 0 : index
    %c0_105 = arith.constant 0 : index
    %184 = vector.load %arg30[%c0_104, %c0_105] : memref<1x32xf32, #tpu.memory_space<vmem>>, vector<1x32xf32>
    %185 = vector.broadcast %184 : vector<1x32xf32> to vector<2x32xf32>
    %186 = arith.addf %183, %185 : vector<2x32xf32>
    %187 = vector.shape_cast %62 : vector<16x32xf32> to vector<2x8x32xf32>
    %188 = vector.shape_cast %186 : vector<2x32xf32> to vector<2x1x32xf32>
    %189 = vector.broadcast %188 : vector<2x1x32xf32> to vector<2x8x32xf32>
    %190 = arith.addf %187, %189 : vector<2x8x32xf32>
    %191 = vector.shape_cast %190 : vector<2x8x32xf32> to vector<16x32xf32>
    %cst_106 = arith.constant dense<0.000000e+00> : vector<16xf32>
    %192 = vector.multi_reduction <add>, %191, %cst_106 [1] : vector<16x32xf32> to vector<16xf32>
    %193 = vector.shape_cast %192 : vector<16xf32> to vector<16x1xf32>
    %cst_107 = arith.constant 3.200000e+01 : f32
    %194 = vector.broadcast %cst_107 : f32 to vector<16x1xf32>
    %195 = arith.divf %193, %194 : vector<16x1xf32>
    %196 = vector.broadcast %195 : vector<16x1xf32> to vector<16x32xf32>
    %197 = arith.subf %191, %196 : vector<16x32xf32>
    %198 = arith.mulf %197, %197 : vector<16x32xf32>
    %cst_108 = arith.constant dense<0.000000e+00> : vector<16xf32>
    %199 = vector.multi_reduction <add>, %198, %cst_108 [1] : vector<16x32xf32> to vector<16xf32>
    %200 = vector.shape_cast %199 : vector<16xf32> to vector<16x1xf32>
    %cst_109 = arith.constant 3.200000e+01 : f32
    %201 = vector.broadcast %cst_109 : f32 to vector<16x1xf32>
    %202 = arith.divf %200, %201 : vector<16x1xf32>
    %203 = vector.broadcast %195 : vector<16x1xf32> to vector<16x32xf32>
    %204 = arith.subf %191, %203 : vector<16x32xf32>
    %cst_110 = arith.constant 9.99999974E-6 : f32
    %205 = vector.broadcast %cst_110 : f32 to vector<16x1xf32>
    %206 = arith.addf %202, %205 : vector<16x1xf32>
    %207 = math.rsqrt %206 : vector<16x1xf32>
    %208 = vector.broadcast %207 : vector<16x1xf32> to vector<16x32xf32>
    %209 = arith.mulf %204, %208 : vector<16x32xf32>
    %c0_111 = arith.constant 0 : index
    %c0_112 = arith.constant 0 : index
    %210 = vector.load %arg31[%c0_111, %c0_112] : memref<1x32xf32, #tpu.memory_space<vmem>>, vector<1x32xf32>
    %211 = vector.broadcast %210 : vector<1x32xf32> to vector<16x32xf32>
    %212 = arith.mulf %209, %211 : vector<16x32xf32>
    %c0_113 = arith.constant 0 : index
    %c0_114 = arith.constant 0 : index
    %213 = vector.load %arg32[%c0_113, %c0_114] : memref<1x32xf32, #tpu.memory_space<vmem>>, vector<1x32xf32>
    %214 = vector.broadcast %213 : vector<1x32xf32> to vector<16x32xf32>
    %215 = arith.addf %212, %214 : vector<16x32xf32>
    %216 = arith.truncf %215 : vector<16x32xf32> to vector<16x32xbf16>
    %c0_115 = arith.constant 0 : index
    %c0_116 = arith.constant 0 : index
    %217 = vector.load %arg39[%c0_115, %c0_116] : memref<32x64xbf16, #tpu.memory_space<vmem>>, vector<32x64xbf16>
    %cst_117 = arith.constant dense<0.000000e+00> : vector<16x64xf32>
    %218 = tpu.matmul %216, %217, %cst_117 {dimension_numbers = #tpu.dot_dimension_numbers<[1], [0], [0], [1], [0, 0, 1, 1], [], []>} : vector<16x32xbf16>, vector<32x64xbf16>, vector<16x64xf32> -> vector<16x64xf32>
    %c0_118 = arith.constant 0 : index
    %c0_119 = arith.constant 0 : index
    %219 = vector.load %arg40[%c0_118, %c0_119] : memref<1x64xf32, #tpu.memory_space<vmem>>, vector<1x64xf32>
    %220 = vector.broadcast %219 : vector<1x64xf32> to vector<16x64xf32>
    %221 = arith.addf %218, %220 : vector<16x64xf32>
    %cst_120 = arith.constant 5.000000e-01 : f32
    %222 = vector.broadcast %cst_120 : f32 to vector<16x64xf32>
    %223 = arith.mulf %222, %221 : vector<16x64xf32>
    %cst_121 = arith.constant 0.707106769 : f32
    %224 = vector.broadcast %cst_121 : f32 to vector<16x64xf32>
    %225 = arith.mulf %221, %224 : vector<16x64xf32>
    %226 = math.erf %225 : vector<16x64xf32>
    %cst_122 = arith.constant 1.000000e+00 : f32
    %227 = vector.broadcast %cst_122 : f32 to vector<16x64xf32>
    %228 = arith.addf %227, %226 : vector<16x64xf32>
    %229 = arith.mulf %223, %228 : vector<16x64xf32>
    %230 = arith.truncf %229 : vector<16x64xf32> to vector<16x64xbf16>
    %c0_123 = arith.constant 0 : index
    %c0_124 = arith.constant 0 : index
    %231 = vector.load %arg41[%c0_123, %c0_124] : memref<64x32xbf16, #tpu.memory_space<vmem>>, vector<64x32xbf16>
    %cst_125 = arith.constant dense<0.000000e+00> : vector<16x32xf32>
    %232 = tpu.matmul %230, %231, %cst_125 {dimension_numbers = #tpu.dot_dimension_numbers<[1], [0], [0], [1], [0, 0, 1, 1], [], []>} : vector<16x64xbf16>, vector<64x32xbf16>, vector<16x32xf32> -> vector<16x32xf32>
    %c0_126 = arith.constant 0 : index
    %c0_127 = arith.constant 0 : index
    %233 = vector.load %arg42[%c0_126, %c0_127] : memref<1x32xf32, #tpu.memory_space<vmem>>, vector<1x32xf32>
    %234 = vector.broadcast %233 : vector<1x32xf32> to vector<16x32xf32>
    %235 = arith.addf %232, %234 : vector<16x32xf32>
    %236 = arith.addf %215, %235 : vector<16x32xf32>
    %cst_128 = arith.constant dense<0.000000e+00> : vector<16xf32>
    %237 = vector.multi_reduction <add>, %236, %cst_128 [1] : vector<16x32xf32> to vector<16xf32>
    %238 = vector.shape_cast %237 : vector<16xf32> to vector<16x1xf32>
    %cst_129 = arith.constant 3.200000e+01 : f32
    %239 = vector.broadcast %cst_129 : f32 to vector<16x1xf32>
    %240 = arith.divf %238, %239 : vector<16x1xf32>
    %241 = vector.broadcast %240 : vector<16x1xf32> to vector<16x32xf32>
    %242 = arith.subf %236, %241 : vector<16x32xf32>
    %243 = arith.mulf %242, %242 : vector<16x32xf32>
    %cst_130 = arith.constant dense<0.000000e+00> : vector<16xf32>
    %244 = vector.multi_reduction <add>, %243, %cst_130 [1] : vector<16x32xf32> to vector<16xf32>
    %245 = vector.shape_cast %244 : vector<16xf32> to vector<16x1xf32>
    %cst_131 = arith.constant 3.200000e+01 : f32
    %246 = vector.broadcast %cst_131 : f32 to vector<16x1xf32>
    %247 = arith.divf %245, %246 : vector<16x1xf32>
    %248 = vector.broadcast %240 : vector<16x1xf32> to vector<16x32xf32>
    %249 = arith.subf %236, %248 : vector<16x32xf32>
    %cst_132 = arith.constant 9.99999974E-6 : f32
    %250 = vector.broadcast %cst_132 : f32 to vector<16x1xf32>
    %251 = arith.addf %247, %250 : vector<16x1xf32>
    %252 = math.rsqrt %251 : vector<16x1xf32>
    %253 = vector.broadcast %252 : vector<16x1xf32> to vector<16x32xf32>
    %254 = arith.mulf %249, %253 : vector<16x32xf32>
    %c0_133 = arith.constant 0 : index
    %c0_134 = arith.constant 0 : index
    %255 = vector.load %arg33[%c0_133, %c0_134] : memref<1x32xf32, #tpu.memory_space<vmem>>, vector<1x32xf32>
    %256 = vector.broadcast %255 : vector<1x32xf32> to vector<16x32xf32>
    %257 = arith.mulf %254, %256 : vector<16x32xf32>
    %c0_135 = arith.constant 0 : index
    %c0_136 = arith.constant 0 : index
    %258 = vector.load %arg34[%c0_135, %c0_136] : memref<1x32xf32, #tpu.memory_space<vmem>>, vector<1x32xf32>
    %259 = vector.broadcast %258 : vector<1x32xf32> to vector<16x32xf32>
    %260 = arith.addf %257, %259 : vector<16x32xf32>
    %c0_137 = arith.constant 0 : index
    %c0_138 = arith.constant 0 : index
    %261 = vector.load %arg43[%c0_137, %c0_138] : memref<16x32xf32, #tpu.memory_space<vmem>>, vector<16x32xf32>
    tpu.vector_store %arg43[%c0_137, %c0_138], %260 {strides = array<i32>} : memref<16x32xf32, #tpu.memory_space<vmem>>, vector<16x32xf32>,
    return
  }
}

</mosaic_0001>

<bundles_post_ra>
// kernel: tpu_custom_call.1
= control target key start
LH: loop header
LB: loop body
LE: loop exit
PB: predicated region body
PF: predicated region fallthrough
CT: control target
= control target key end

     0   :  { %s2839_s6 = smov 1   ;;  %s2840_s10 = smov 2   ;;  %s3395_s0 = inlined_call_operand.smem [shape: u32[44], index: -1, kind: input, shape index: {}] }
   0x1   :  { %s2904_s5 = sld [smem:[%s3395_s0]]   ;;  %s2841_s14 = smov 3  }
   0x2   :  { %s2909_s9 = sld [smem:[%s3395_s0 + %s2839_s6]]   ;;  %s2842_s18 = smov 4  }
   0x3   :  { %s2914_s13 = sld [smem:[%s3395_s0 + %s2840_s10]]   ;;  %s2843_s22 = smov 5  }
   0x4   :  { %s2919_s17 = sld [smem:[%s3395_s0 + %s2841_s14]]   ;;  %s2844_s26 = smov 6  }
   0x5   :  { %s2924_s21 = sld [smem:[%s3395_s0 + %s2842_s18]]   ;;  %s2845_s30 = smov 7  }
   0x6   :  { %s2929_s25 = sld [smem:[%s3395_s0 + %s2843_s22]]   ;;  %s2846_s4 = smov 8  }
   0x7   :  { %s2934_s29 = sld [smem:[%s3395_s0 + %s2844_s26]]   ;;  %s2847_s10 = smov 9  }
   0x8   :  { %s2939_s3 = sld [smem:[%s3395_s0 + %s2845_s30]]   ;;  %s2848_s15 = smov 10  }
   0x9   :  { %3404 = sst [smem:[#allocation7_spill]] %s2914_s13  ;;  %s2849_s20 = smov 11  }
   0xa   :  { %3405 = sst [smem:[#allocation8_spill]] %s2919_s17  ;;  %s2850_s26 = smov 12  }
   0xb   :  { %s2944_s8 = sld [smem:[%s3395_s0 + %s2846_s4]]   ;;  %s2851_s1 = smov 13  }
   0xc   :  { %3406 = sst [smem:[#allocation9_spill]] %s2929_s25  ;;  %s2852_s7 = smov 14  }
   0xd   :  { %3407 = sst [smem:[#allocation10_spill]] %s2934_s29  ;;  %s2854_s22 = smov 16  }
   0xe   :  { %s2949_s14 = sld [smem:[%s3395_s0 + %s2847_s10]]   ;;  %s2855_s28 = smov 17  }
   0xf   :  { %s2954_s19 = sld [smem:[%s3395_s0 + %s2848_s15]]   ;;  %s2853_s15 = smov 15  }
  0x10   :  { %s2959_s24 = sld [smem:[%s3395_s0 + %s2849_s20]]   ;;  %s2862_s13 = smov 25  }
  0x11   :  { %s2335_s30 = sld [smem:[%s3395_s0 + %s2850_s26]]   ;;  %s2863_s25 = smov 26  }
  0x12   :  { %s2967_s6 = sld [smem:[%s3395_s0 + %s2851_s1]]   ;;  %s2859_s1 = smov 22  }
  0x13   :  { %s2972_s12 = sld [smem:[%s3395_s0 + %s2852_s7]]   ;;  %s2856_s7 = smov 19  }
  0x14   :  { %s2977_s20 = sld [smem:[%s3395_s0 + %s2853_s15]]   ;;  %s2857_s15 = smov 20  }
  0x15   :  { %s2982_s27 = sld [smem:[%s3395_s0 + %s2854_s22]]   ;;  %s2858_s22 = smov 21  }
  0x16   :  { %s2987_s4 = sld [smem:[%s3395_s0 + %s2855_s28]]  }
  0x17   :  { %s2992_s29 = sld [smem:[%s3395_s0 + %s2856_s7]]   ;;  %v92_v0 = vstv %s2335_s30  ;;  %s2860_s30 = smov 23  }
  0x18   :  { %s2997_s23 = sld [smem:[%s3395_s0 + %s2857_s15]]   ;;  %93 = vst [vmem:[#allocation2] sm:$0x1] %v92_v0  ;;  %s2861_s15 = smov 24  }
  0x19   :  { %s3002_s28 = sld [smem:[%s3395_s0 + %s2858_s22]]  }
  0x1a   :  { %s3007_s7 = sld [smem:[%s3395_s0 + %s2859_s1]]  }
  0x1b   :  { %s3012_s16 = sld [smem:[%s3395_s0 + %s2860_s30]]   ;;  %s2864_s30 = smov 27  }
  0x1c   :  { %s3017_s17 = sld [smem:[%s3395_s0 + %s2861_s15]]  }
  0x1e   :  { %3408 = sst [smem:[#allocation11_spill]] %s2997_s23  ;;  %s2865_s23 = smov 28  }
  0x1f   :  { %3409 = sst [smem:[#allocation12_spill]] %s3002_s28 }
  0x20   :  { %3410 = sst [smem:[#allocation13_spill]] %s3007_s7 }
  0x21   :  { %3411 = sst [smem:[#allocation14_spill]] %s3012_s16 }
  0x22   :  { %3412 = sst [smem:[#allocation15_spill]] %s3017_s17 }
  0x23   :  { %s3022_s28 = sld [smem:[%s3395_s0 + %s2862_s13]]   ;;  %s2866_s13 = smov 29  }
  0x24   :  { %s3027_s7 = sld [smem:[%s3395_s0 + %s2863_s25]]   ;;  %s2867_s25 = smov 30  }
  0x25   :  { %s3032_s16 = sld [smem:[%s3395_s0 + %s2864_s30]]   ;;  %s2868_s30 = smov 31  }
  0x26   :  { %s3037_s17 = sld [smem:[%s3395_s0 + %s2865_s23]]   ;;  %s2869_s23 = smov 32  }
  0x29   :  { %3413 = sst [smem:[#allocation16_spill]] %s3022_s28 }
  0x2a   :  { %3414 = sst [smem:[#allocation17_spill]] %s3027_s7 }
  0x2b   :  { %3415 = sst [smem:[#allocation18_spill]] %s3032_s16 }
  0x2c   :  { %3416 = sst [smem:[#allocation19_spill]] %s3037_s17 }
  0x2d   :  { %s3042_s28 = sld [smem:[%s3395_s0 + %s2866_s13]]   ;;  %s2870_s13 = smov 33  }
  0x2e   :  { %s3047_s7 = sld [smem:[%s3395_s0 + %s2867_s25]]   ;;  %s2871_s25 = smov 34  }
  0x2f   :  { %s3052_s16 = sld [smem:[%s3395_s0 + %s2868_s30]]   ;;  %s2872_s30 = smov 35  }
  0x30   :  { %s3057_s17 = sld [smem:[%s3395_s0 + %s2869_s23]]   ;;  %s2873_s23 = smov 36  }
  0x33   :  { %3417 = sst [smem:[#allocation20_spill]] %s3042_s28 }
  0x34   :  { %3418 = sst [smem:[#allocation21_spill]] %s3047_s7 }
  0x35   :  { %3419 = sst [smem:[#allocation22_spill]] %s3052_s16 }
  0x36   :  { %3420 = sst [smem:[#allocation23_spill]] %s3057_s17 }
  0x37   :  { %s3062_s28 = sld [smem:[%s3395_s0 + %s2870_s13]]   ;;  %s2874_s13 = smov 37  }
  0x38   :  { %s3067_s7 = sld [smem:[%s3395_s0 + %s2871_s25]]   ;;  %s2875_s25 = smov 38  }
  0x39   :  { %s3072_s16 = sld [smem:[%s3395_s0 + %s2872_s30]]   ;;  %s2876_s30 = smov 39  }
  0x3a   :  { %s3077_s17 = sld [smem:[%s3395_s0 + %s2873_s23]]   ;;  %s2877_s23 = smov 40  }
  0x3d   :  { %3421 = sst [smem:[#allocation24_spill]] %s3062_s28 }
  0x3e   :  { %3422 = sst [smem:[#allocation25_spill]] %s3067_s7 }
  0x3f   :  { %3423 = sst [smem:[#allocation26_spill]] %s3072_s16 }
  0x40   :  { %3424 = sst [smem:[#allocation27_spill]] %s3077_s17 }
  0x41   :  { %s3082_s28 = sld [smem:[%s3395_s0 + %s2874_s13]]   ;;  %s2878_s13 = smov 41  }
  0x42   :  { %s3087_s7 = sld [smem:[%s3395_s0 + %s2875_s25]]   ;;  %s2879_s25 = smov 42  }
  0x43   :  { %s3092_s16 = sld [smem:[%s3395_s0 + %s2876_s30]]   ;;  %s2880_s30 = smov 43  }
  0x44   :  { %s3097_s17 = sld [smem:[%s3395_s0 + %s2877_s23]]   ;;  %s2881_s23 = smov 18  }
  0x47   :  { %3425 = sst [smem:[#allocation28_spill]] %s3082_s28 }
  0x48   :  { %3426 = sst [smem:[#allocation29_spill]] %s3087_s7 }
  0x49   :  { %3427 = sst [smem:[#allocation30_spill]] %s3092_s16 }
  0x4a   :  { %3428 = sst [smem:[#allocation31_spill]] %s3097_s17 }
  0x4b   :  { %s3102_s28 = sld [smem:[%s3395_s0 + %s2878_s13]]  }
  0x4c   :  { %s3107_s7 = sld [smem:[%s3395_s0 + %s2879_s25]]  }
  0x4d   :  { %s3112_s16 = sld [smem:[%s3395_s0 + %s2880_s30]]  }
  0x4e   :  { %s2341_s17 = sld [smem:[%s3395_s0 + %s2881_s23]]  }
  0x54   :  { %v94_v1 = vstv %s2341_s17 }
  0x55   :  { %95 = vst [vmem:[#allocation3] sm:$0x1] %v94_v1 }
  0x56   :  { %v184_v2 = vld [vmem:[%s2904_s5] sm:$0x3]  ;;  %v2882_v4 = vmov 0  }
  0x57   :  { %v1411_v3 = vld [vmem:[%s2924_s21] sm:$0xff]  ;;  %2753 = vset.pattern.permute.xlu0 %v2882_v4  ;;  %2754 = vset.pattern.permute.xlu1 %v2882_v4 }
  0x58   :  { %188 = vperm.xlu0 %2753, %v184_v2   ;;  %v657_v5 = vld [vmem:[%s2909_s9] sm:$0x3]  ;;  %v1413_v6 = vmul.f32 -1e+30, %v1411_v3 }
  0x5c   :  { %661 = vperm.xlu0 %2753, %v657_v5  }
  0x60   :  { %1417 = vperm.xlu0 %2753, %v1413_v6  }
  0x61   :  { %96 = vsyncpa [#allocation5], 0  ;;  %v408_v7 = vld [vmem:[%s2949_s14] sm:$0xff]  ;;  %v409_v8 = vld [vmem:[%s2949_s14 + $0x8] sm:$0xff]  ;;  %v2883_v9 = vmov 0.0|0.0   ;;  %vm2884_vm0 = vmmov 0  }
  0x62   :  { %2652 = vmatprep.subr.bf16.mxu1 %v2883_v9  ;;  %v2653_v10 = vpack.c.bf16 %v409_v8, %v408_v7  ;;  %v2885_v11 = vmov 0.0   ;;  %2658 = vmatprep.subr.bf16.mxu0 %v2883_v9  ;;  %v2367_v12 = vld [vmem:[%s2939_s3] ss:$0 sm:$0xff]  ;;  %v2886_v36 = vmov 683565275   ;;  %s3431_s0 = sld [smem:[#allocation8_spill]] }
  0x63   :  { %2513 = vmatprep.mubr.msk.f32.mxu1 %vm2884_vm0, %v2885_v11  ;;  %2531 = vmatprep.mubr.msk.f32.mxu0 %vm2884_vm0, %v2885_v11  ;;  %v2382_v15 = vld [vmem:[%s2967_s6] ss:$0 sm:$0xff]  ;;  %v2887_v40 = vmov 2475754826   ;;  %v2888_v42 = vmov 2131351028  }
  0x64   :  { %2654 = vmatpush3.bf16.msra.mxu1 %v2653_v10  ;;  %v2889_v44 = vmov 2102212464   ;;  %v2890_v46 = vmov 920167782   ;;  %v2891_v53 = vmov 1326507024  }
  0x65   :  { %2655 = vmatprep.subr.bf16.mxu1 %v2883_v9  ;;  %s3432_s5 = sld [smem:[#allocation12_spill]]  ;;  %s3433_s9 = sld [smem:[#allocation14_spill]] }
  0x66   :  { %s3434_s17 = sld [smem:[#allocation9_spill]]  ;;  %s3437_s3 = sld [smem:[#allocation13_spill]] }
  0x67   :  { %s3439_s14 = sld [smem:[#allocation16_spill]]  ;;  %s3442_s6 = sld [smem:[#allocation26_spill]] }
  0x68   :  { %s3447_s13 = sld [smem:[#allocation29_spill]]  ;;  %s3448_s22 = sld [smem:[#allocation20_spill]] }
  0x69   :  { %s3449_s26 = sld [smem:[#allocation21_spill]]  ;;  %s3450_s25 = sld [smem:[#allocation30_spill]] }
  0x6a   :  { %s3451_s1 = sld [smem:[#allocation22_spill]]  ;;  %s3452_s2 = sld [smem:[#allocation23_spill]] }
  0x6b   :  { %s3453_s30 = sld [smem:[#allocation31_spill]]  ;;  %s2893_s10 = smov [#allocation4]  }
  0x6c   :  { %s2313_s11 = sshll.u32 %s2893_s10, 4  ;;  %s2314_s11 = int_to_ptr.vmem [resolvable:$true] %s2313_s11 }
  0x6d   :  { %s2815_s23 = scalar_lea.vmem %s2314_s11, 256  ;;  %p2820_p1 = scmp.lt.s32.totalorder %s2314_s11, %s2314_s11 }
  0x6e   :  { %p2816_p0 = scmp.ne.s32.totalorder %s2314_s11, %s2815_s23  ;;  %p2821_p2 = scmp.lt.s32.totalorder %s2815_s23, %s2815_s23 }
  0x70   :  { %p2822_p3 = por %p2821_p2, %p2820_p1 }
  0x72   :  { %p2823_p4 = pnand %p2822_p3, %p2816_p0 }
  0xd7   :  { %v189_v13 = vpop.permute.xlu0 %188 }
  0xd8   :  { %v197_v14 = vmul.f32 %v2367_v12, %v189_v13 }
  0xda   :  { %v3131_v16 = vmul.f32 6.2831855, %v197_v14 }
  0xdb   :  { %v662_v17 = vpop.permute.xlu0 %661 }
  0xdc   :  { %v199_v18 = vand.u32 2147483647, %v3131_v16  ;;  %v202_v19 = vand.u32 2139095040, %v3131_v16  ;;  %v670_v20 = vmul.f32 %v2382_v15, %v662_v17  ;;  %vm201_vm15 = vcmp.lt.s32.totalorder %v3131_v16, 0 }
  0xde   :  { %v203_v21 = vshrl.u32 %v202_v19, 23  ;;  %v3135_v22 = vmul.f32 6.2831855, %v670_v20  ;;  %v206_v23 = vand.u32 8388607, %v199_v18 }
  0xe0   :  { %v2368_v24 = vadd.s32 4294967169, %v203_v21  ;;  %v675_v25 = vand.u32 2139095040, %v3135_v22  ;;  %v207_v27 = vor.u32 8388608, %v206_v23  ;;  %v672_v29 = vand.u32 2147483647, %v3135_v22 }
  0xe2   :  { %v209_v26 = vadd.s32 1, %v2368_v24  ;;  %v676_v28 = vshrl.u32 %v675_v25, 23  ;;  %v3141_v34 = vshll.u32 %v207_v27, 8  ;;  %v679_v38 = vand.u32 8388607, %v672_v29 }
  0xe4   :  { %vm210_vm1 = vcmp.gt.s32.totalorder %v209_v26, 0  ;;  %v2383_v31 = vadd.s32 4294967169, %v676_v28  ;;  %v680_v4 = vor.u32 8388608, %v679_v38 }
  0xe5   :  { %v211_v30 = vsel %vm210_vm1, %v209_v26, 0  ;;  %vm200_vm1 = vcmp.le.f32.partialorder %v199_v18, 0.7853982 }
  0xe6   :  { %v212_v32 = vshrl.u32 %v211_v30, 5  ;;  %v213_v33 = vand.u32 31, %v211_v30  ;;  %v682_v39 = vadd.s32 1, %v2383_v31  ;;  %v720_v21 = vshll.u32 %v680_v4, 8 }
  0xe8   :  { %v214_v35 = vsub.s32 32, %v213_v33  ;;  %v216_v37 = vshll.u32 %v2886_v36, %v213_v33  ;;  %v219_v41 = vshll.u32 %v2887_v40, %v213_v33  ;;  %v222_v43 = vshll.u32 %v2888_v42, %v213_v33 }
  0xe9   :  { %v225_v45 = vshll.u32 %v2889_v44, %v213_v33  ;;  %v228_v47 = vshll.u32 %v2890_v46, %v213_v33  ;;  %vm231_vm2 = vcmp.lt.s32.totalorder %v212_v32, 1  ;;  %vm233_vm3 = vcmp.lt.s32.totalorder %v212_v32, 3 }
  0xea   :  { %v217_v48 = vshrl.u32 %v2887_v40, %v214_v35  ;;  %v220_v49 = vshrl.u32 %v2888_v42, %v214_v35  ;;  %v223_v50 = vshrl.u32 %v2889_v44, %v214_v35  ;;  %v215_v51 = vshrl.u32 %v2886_v36, %v214_v35 }
  0xeb   :  { %v226_v52 = vshrl.u32 %v2890_v46, %v214_v35  ;;  %v229_v54 = vshrl.u32 %v2891_v53, %v214_v35  ;;  %vm683_vm4 = vcmp.gt.s32.totalorder %v682_v39, 0  ;;  %vm234_vm5 = vcmp.lt.s32.totalorder %v212_v32, 4 }
  0xec   :  { %v218_v55 = vor.u32 %v217_v48, %v216_v37  ;;  %v221_v56 = vor.u32 %v220_v49, %v219_v41  ;;  %v224_v57 = vor.u32 %v223_v50, %v222_v43  ;;  %v684_v60 = vsel %vm683_vm4, %v682_v39, 0 }
  0xed   :  { %v227_v58 = vor.u32 %v226_v52, %v225_v45  ;;  %v230_v59 = vor.u32 %v229_v54, %v228_v47  ;;  %vm232_vm6 = vcmp.lt.s32.totalorder %v212_v32, 2  ;;  %v686_v7 = vand.u32 31, %v684_v60 }
  0xee   :  { %v235_v61 = vsel %vm231_vm2, %v215_v51, %v218_v55  ;;  %v236_v62 = vsel %vm234_vm5, %v224_v57, 2102212464  ;;  %v239_v63 = vsel %vm231_vm2, %v218_v55, %v221_v56  ;;  %v243_v0 = vsel %vm231_vm2, %v221_v56, %v224_v57 }
  0xef   :  { %v237_v1 = vsel %vm233_vm3, %v221_v56, %v236_v62  ;;  %v240_v2 = vsel %vm234_vm5, %v227_v58, 920167782  ;;  %v244_v3 = vsel %vm234_vm5, %v230_v59, 1326507024  ;;  %v685_v19 = vshrl.u32 %v684_v60, 5 }
  0xf0   :  { %v241_v5 = vsel %vm233_vm3, %v224_v57, %v240_v2  ;;  %v245_v6 = vsel %vm233_vm3, %v227_v58, %v244_v3  ;;  %v238_v8 = vsel %vm232_vm6, %v235_v61, %v237_v1  ;;  %v687_v20 = vsub.s32 32, %v686_v7 }
  0xf1   :  { %v242_v10 = vsel %vm232_vm6, %v239_v63, %v241_v5  ;;  %v246_v12 = vsel %vm232_vm6, %v243_v0, %v245_v6  ;;  %v254_v23 = vmul.u32 %v3141_v34, %v238_v8  ;;  %v689_v24 = vshll.u32 %v2886_v36, %v686_v7 }
  0xf2   :  { %v3154_v13 = vmul.u32.u64.low %v3141_v34, %v246_v12  ;;  %v3155_v14 = vmul.u32.u64.high %v3141_v34, %v246_v12, %v3154_v13  ;;  %v3158_v15 = vmul.u32.u64.low %v3141_v34, %v242_v10  ;;  %v3159_v17 = vmul.u32.u64.high %v3141_v34, %v242_v10, %v3158_v15 }
  0xf3   :  { %v692_v25 = vshll.u32 %v2887_v40, %v686_v7  ;;  %v695_v26 = vshll.u32 %v2888_v42, %v686_v7  ;;  %v690_v27 = vshrl.u32 %v2887_v40, %v687_v20  ;;  %v693_v28 = vshrl.u32 %v2888_v42, %v687_v20 }
  0xf4   :  { %v696_v30 = vshrl.u32 %v2889_v44, %v687_v20  ;;  %v698_v31 = vshll.u32 %v2889_v44, %v686_v7  ;;  %vm256_vm7 = vc.u32 %v3155_v14, %v3158_v15  ;;  %v257_v32 = vadd.s32 1, %v3159_v17 }
  0xf5   :  { %v699_v33 = vshrl.u32 %v2890_v46, %v687_v20  ;;  %v701_v35 = vshll.u32 %v2890_v46, %v686_v7  ;;  %v691_v37 = vor.u32 %v690_v27, %v689_v24  ;;  %v694_v38 = vor.u32 %v693_v28, %v692_v25 }
  0xf6   :  { %v697_v39 = vor.u32 %v696_v30, %v695_v26  ;;  %v702_v41 = vshrl.u32 %v2891_v53, %v687_v20  ;;  %v258_v34 = vsel %vm256_vm7, %v257_v32, %v3159_v17  ;;  %vm704_vm8 = vcmp.lt.s32.totalorder %v685_v19, 1 }
  0xf7   :  { %v700_v43 = vor.u32 %v699_v33, %v698_v31  ;;  %vm707_vm9 = vcmp.lt.s32.totalorder %v685_v19, 4  ;;  %v259_v40 = vadd.s32 %v258_v34, %v254_v23  ;;  %vm706_vm10 = vcmp.lt.s32.totalorder %v685_v19, 3 }
  0xf8   :  { %v703_v42 = vor.u32 %v702_v41, %v701_v35  ;;  %v709_v44 = vsel %vm707_vm9, %v697_v39, 2102212464  ;;  %v688_v45 = vshrl.u32 %v2886_v36, %v687_v20  ;;  %v712_v47 = vsel %vm704_vm8, %v691_v37, %v694_v38 }
  0xf9   :  { %v713_v48 = vsel %vm707_vm9, %v700_v43, 920167782  ;;  %v716_v49 = vsel %vm704_vm8, %v694_v38, %v697_v39  ;;  %v260_v50 = vadd.s32 536870912, %v259_v40  ;;  %vm705_vm11 = vcmp.lt.s32.totalorder %v685_v19, 2 }
  0xfa   :  { %v714_v46 = vsel %vm706_vm10, %v697_v39, %v713_v48  ;;  %v717_v51 = vsel %vm707_vm9, %v703_v42, 1326507024  ;;  %v708_v52 = vsel %vm704_vm8, %v688_v45, %v691_v37  ;;  %v710_v53 = vsel %vm706_vm10, %v694_v38, %v709_v44 }
  0xfb   :  { %v715_v54 = vsel %vm705_vm11, %v712_v47, %v714_v46  ;;  %v718_v55 = vsel %vm706_vm10, %v700_v43, %v717_v51  ;;  %v261_v56 = vshrl.u32 %v260_v50, 30  ;;  %v711_v62 = vsel %vm705_vm11, %v708_v52, %v710_v53 }
  0xfc   :  { %v719_v57 = vsel %vm705_vm11, %v716_v49, %v718_v55  ;;  %v3169_v58 = vmul.u32.u64.low %v720_v21, %v715_v54  ;;  %v3170_v59 = vmul.u32.u64.high %v720_v21, %v715_v54, %v3169_v58  ;;  %v727_v1 = vmul.u32 %v720_v21, %v711_v62 }
  0xfd   :  { %v3172_v60 = vmul.u32.u64.low %v720_v21, %v719_v57  ;;  %v3173_v61 = vmul.u32.u64.high %v720_v21, %v719_v57, %v3172_v60  ;;  %v262_v36 = vshll.u32 %v261_v56, 30  ;;  %v255_v19 = vadd.s32 %v3158_v15, %v3155_v14 }
  0xfe   :  { %v730_v0 = vadd.s32 1, %v3170_v59  ;;  %v285_v34 = vsub.s32 4, %v261_v56  ;;  %vm674_vm2 = vcmp.lt.s32.totalorder %v3135_v22, 0  ;;  %v304_v60 = vld [vmem:[%s2944_s8 + $0x8] sm:$0xff]  ;;  %vm3190_vm3 = vcmp.le.f32.partialorder %v672_v29, 0.7853982 }
  0xff   :  { %v263_v63 = vsub.s32 %v259_v40, %v262_v36  ;;  %vm729_vm12 = vc.u32 %v3173_v61, %v3169_v58  ;;  %v728_v41 = vadd.s32 %v3169_v58, %v3173_v61  ;;  %vm410_vm4 = vcmask 130048  }
 0x100   :  { %v731_v3 = vsel %vm729_vm12, %v730_v0, %v3170_v59  ;;  %v286_v49 = vsel %vm201_vm15, %v285_v34, %v261_v56  ;;  %v303_v59 = vld [vmem:[%s2944_s8] sm:$0xff]  ;;  %vm291_vm10 = vweird.f32 %v3131_v16  ;;  %v573_v34 = vld [vmem:[%s2959_s24 + $0x8] sm:$0xff]  ;;  %s3438_s8 = sld [smem:[#allocation10_spill]] }
 0x101   :  { %v265_v2 = vsub.s32 0, %v263_v63  ;;  %v732_v4 = vadd.s32 %v731_v3, %v727_v1  ;;  %v288_v51 = vsel %vm200_vm1, 0, %v286_v49  ;;  %v2656_v3 = vpack.c.bf16 %v304_v60, %v303_v59  ;;  %v2378_v49 = vld [vmem:[%s2954_s19] ss:$0 sm:$0xff]  ;;  %s3440_s19 = sld [smem:[#allocation15_spill]] }
 0x102   :  { %v292_v55 = vadd.s32 3, %v288_v51  ;;  %v398_v18 = vand.u32 3, %v288_v51 }
 0x103   :  { %v2369_v5 = vmin.u32 %v265_v2, %v263_v63  ;;  %v733_v6 = vadd.s32 536870912, %v732_v4 }
 0x104   :  { %v293_v36 = vand.u32 3, %v292_v55  ;;  %vm400_vm5 = vcmp.eq.s32.totalorder %v398_v18, 0  ;;  %vm403_vm6 = vcmp.eq.s32.totalorder %v398_v18, 2  ;;  %vm399_vm9 = vcmp.lt.s32.totalorder %v398_v18, 2 }
 0x105   :  { %v267_v7 = vclz %v2369_v5  ;;  %v734_v8 = vshrl.u32 %v733_v6, 30 }
 0x106   :  { %vm295_vm7 = vcmp.eq.s32.totalorder %v293_v36, 0  ;;  %vm298_vm8 = vcmp.eq.s32.totalorder %v293_v36, 2  ;;  %vm294_vm11 = vcmp.lt.s32.totalorder %v293_v36, 2  ;;  %v1044_v36 = vld [vmem:[%s2987_s4] sm:$0xff] }
 0x107   :  { %v2370_v10 = vadd.s32 4294967294, %v267_v7  ;;  %v735_v12 = vshll.u32 %v734_v8, 30  ;;  %v758_v57 = vsub.s32 4, %v734_v8 }
 0x109   :  { %vm2371_vm13 = vcmp.lt.s32.totalorder %v2370_v10, 0  ;;  %v736_v17 = vsub.s32 %v732_v4, %v735_v12  ;;  %v759_v0 = vsel %vm674_vm2, %v758_v57, %v734_v8  ;;  %v881_v12 = vld [vmem:[%s2977_s20] sm:$0xff] }
 0x10a   :  { %v270_v13 = vsel %vm2371_vm13, 0, %v2370_v10  ;;  %v761_v5 = vsel %vm3190_vm3, 0, %v759_v0  ;;  %v2393_v57 = vld [vmem:[%s2982_s27] ss:$0 sm:$0xff]  ;;  %s3445_s27 = sld [smem:[#allocation28_spill]] }
 0x10b   :  { %v271_v20 = vsub.s32 32, %v270_v13  ;;  %v275_v21 = vsub.s32 4294967266, %v270_v13  ;;  %v738_v23 = vsub.s32 0, %v736_v17  ;;  %v272_v24 = vshll.u32 %v263_v63, %v270_v13  ;;  %v882_v13 = vld [vmem:[%s2977_s20 + $0x8] sm:$0xff]  ;;  %s3444_s20 = sld [smem:[#allocation19_spill]] }
 0x10d   :  { %v273_v25 = vshrl.u32 %v255_v19, %v271_v20  ;;  %v276_v26 = vadd.s32 127, %v275_v21  ;;  %v2384_v27 = vmin.u32 %v738_v23, %v736_v17  ;;  %v765_v19 = vadd.s32 3, %v761_v5 }
 0x10e   :  { %v2665_v21 = vpack.c.bf16 %v882_v13, %v881_v12  ;;  %v871_v23 = vand.u32 3, %v761_v5  ;;  %v3243_v12 = vld [vmem:[%s3431_s0] sm:$0x3]  ;;  %v2892_v13 = vmov 1966171168  }
 0x10f   :  { %v274_v28 = vor.u32 %v273_v25, %v272_v24  ;;  %v277_v30 = vshll.u32 %v276_v26, 23  ;;  %v740_v31 = vclz %v2384_v27  ;;  %v777_v25 = vld [vmem:[%s2972_s12 + $0x8] sm:$0xff]  ;;  %v766_v26 = vand.u32 3, %v765_v19 }
 0x110   :  { %vm876_vm12 = vcmp.eq.s32.totalorder %v871_v23, 2  ;;  %vm873_vm13 = vcmp.eq.s32.totalorder %v871_v23, 0  ;;  %v1135_v19 = vlaneseq }
 0x111   :  { %v278_v32 = vor.u32 4788187, %v277_v30  ;;  %v2385_v33 = vadd.s32 4294967294, %v740_v31  ;;  %v281_v37 = vcvt.s32.f32 %v274_v28 }
 0x113   :  { %v279_v35 = vand.u32 2147483647, %v278_v32  ;;  %vm2386_vm14 = vcmp.lt.s32.totalorder %v2385_v33, 0 }
 0x114   :  { %v743_v39 = vsel %vm2386_vm14, 0, %v2385_v33  ;;  %vm768_vm14 = vcmp.eq.s32.totalorder %v766_v26, 0 }
 0x115   :  { %v282_v38 = vmul.f32 %v281_v37, %v279_v35  ;;  %v744_v14 = vsub.s32 32, %v743_v39  ;;  %v748_v15 = vsub.s32 4294967266, %v743_v39  ;;  %v745_v40 = vshll.u32 %v736_v17, %v743_v39 }
 0x117   :  { %v283_v43 = vxor.u32 2147483648, %v282_v38  ;;  %v746_v42 = vshrl.u32 %v728_v41, %v744_v14  ;;  %v749_v44 = vadd.s32 127, %v748_v15 }
 0x119   :  { %v284_v45 = vsel %vm201_vm15, %v283_v43, %v282_v38  ;;  %v747_v47 = vor.u32 %v746_v42, %v745_v40  ;;  %v750_v48 = vshll.u32 %v749_v44, 23  ;;  %vm771_vm15 = vcmp.eq.s32.totalorder %v766_v26, 2  ;;  %v574_v40 = vld [vmem:[%s2959_s24 + $0x10] sm:$0xff]  ;;  %v575_v42 = vld [vmem:[%s2959_s24 + $0x18] sm:$0xff] }
 0x11a   :  { %v287_v50 = vsel %vm200_vm1, %v3131_v16, %v284_v45  ;;  %v776_v16 = vld [vmem:[%s2972_s12] sm:$0xff]  ;;  %vm872_vm1 = vcmp.lt.s32.totalorder %v871_v23, 2  ;;  %v2662_v44 = vpack.c.bf16 %v575_v42, %v574_v40  ;;  %v1408_v40 = vld [vmem:[%s3434_s17 + $0x8] sm:$0xff]  ;;  %s3443_s12 = sld [smem:[#allocation18_spill]] }
 0x11b   :  { %2775 = vcosq.f32 %v287_v50  ;;  %v751_v46 = vor.u32 4788187, %v750_v48  ;;  %v754_v53 = vcvt.s32.f32 %v747_v47  ;;  %v2668_v32 = vpack.c.bf16 %v777_v25, %v776_v16 }
 0x11c   :  { %2777 = vsinq.f32 %v287_v50 }
 0x11d   :  { %v752_v52 = vand.u32 2147483647, %v751_v46 }
 0x11f   :  { %v755_v54 = vmul.f32 %v754_v53, %v752_v52 }
 0x121   :  { %v756_v58 = vxor.u32 2147483648, %v755_v54 }
 0x123   :  { %v757_v61 = vsel %vm674_vm2, %v756_v58, %v755_v54  ;;  %vm764_vm2 = vweird.f32 %v3135_v22 }
 0x124   :  { %v760_v63 = vsel %vm3190_vm3, %v3135_v22, %v757_v61  ;;  %vm767_vm3 = vcmp.lt.s32.totalorder %v766_v26, 2  ;;  %v572_v22 = vld [vmem:[%s2959_s24] sm:$0xff]  ;;  %s3441_s24 = sld [smem:[#allocation17_spill]] }
 0x125   :  { %v2776_v62 = vpop.eup %2775  ;;  %2779 = vcosq.f32 %v760_v63  ;;  %v2659_v43 = vpack.c.bf16 %v573_v34, %v572_v22  ;;  %v2759_v22 = vld [vmem:[%s3432_s5 + $0x8] sm:$0xff]  }
 0x126   :  { %v2778_v1 = vpop.eup %2777  ;;  %v299_v2 = vxor.u32 2147483648, %v2776_v62  ;;  %2781 = vsinq.f32 %v760_v63  ;;  %v2760_v34 = vld [vmem:[%s3433_s9 + $0x8] sm:$0xff]  }
 0x127   :  { %v296_v29 = vxor.u32 2147483648, %v2778_v1  ;;  %2660 = vmatpush3.bf16.msra.mxu0 %v2659_v43  ;;  %v1407_v43 = vld [vmem:[%s3434_s17] sm:$0xff] }
 0x128   :  { %v405_v4 = vsel %vm403_vm6, %v299_v2, %v2778_v1  ;;  %v300_v7 = vsel %vm298_vm8, %v299_v2, %v2778_v1  ;;  %2661 = vmatprep.subr.bf16.mxu0 %v2883_v9  ;;  %v2676_v42 = vpack.c.bf16 %v1408_v40, %v1407_v43  ;;  %vm1506_vm6 = vcmask 31744  }
 0x129   :  { %v297_v6 = vsel %vm295_vm7, %v2776_v62, %v296_v29  ;;  %v402_v8 = vsel %vm400_vm5, %v2776_v62, %v296_v29  ;;  %v1045_v62 = vld [vmem:[%s2987_s4 + $0x8] sm:$0xff]  ;;  %v1046_v29 = vld [vmem:[%s2987_s4 + $0x10] sm:$0xff]  ;;  %vm1548_vm5 = vcmask 1043456   ;;  %vm1645_vm7 = vcmask 1041409  }
 0x12a   :  { %v406_v10 = vsel %vm399_vm9, %v402_v8, %v405_v4  ;;  %v301_v20 = vsel %vm294_vm11, %v297_v6, %v300_v7  ;;  %v2671_v2 = vpack.c.bf16 %v1045_v62, %v1044_v36  ;;  %v1047_v4 = vld [vmem:[%s2987_s4 + $0x18] sm:$0xff]  ;;  %v2755_v8 = vld [vmem:[%s2992_s29] sm:$0xff]   ;;  %vm1802_vm8 = vcmask 254976   ;;  %s3446_s4 = sld [smem:[#allocation27_spill]] }
 0x12b   :  { %v407_v17 = vsel %vm291_vm10, nan, %v406_v10  ;;  %v302_v24 = vsel %vm291_vm10, nan, %v301_v20  ;;  %2663 = vmatpush3.bf16.msra.mxu0 %v2662_v44  ;;  %v2674_v5 = vpack.c.bf16 %v1047_v4, %v1046_v29  ;;  %v2756_v10 = vld [vmem:[%s2992_s29 + $0x8] sm:$0xff]   ;;  %v2380_v20 = vld [vmem:[#allocation2] ss:$0 sm:$0xff]  ;;  %s3435_s29 = sld [smem:[#allocation7_spill]] }
 0x12c   :  { %2514 = vmatmul.mubr.msk.f32.vlgmr.msra.gmra.mrb[0].mxu1 %vm410_vm4, %v407_v17  ;;  %2670 = vmatprep.subr.bf16.mxu0 %v2883_v9  ;;  %v1133_v17 = vunpack.c.l.s4 %v2892_v13  ;;  %v2401_v62 = vld [vmem:[%s3437_s3] ss:$0 sm:$0xff]  ;;  %vm1945_vm9 = vcmask 523264  }
 0x12d   :  { %2657 = vmatpush3.bf16.msra.mxu1 %v2656_v3  ;;  %2520 = vmatprep.mubr.msk.f32.mxu1 %vm2884_vm0, %v2885_v11 }
 0x12e   :  { %2664 = vmatprep.subr.bf16.mxu1 %v2883_v9  ;;  %v1134_v23 = vunpack.c.0.s8 %v1133_v17  ;;  %v1541_v17 = vld [vmem:[%s3438_s8] sm:$0xf] }
 0x12f   :  { %v2780_v27 = vpop.eup %2779 }
 0x130   :  { %2521 = vmatmul.mubr.msk.f32.vlgmr.msra.gmra.mrb[2].mxu1 %vm410_vm4, %v302_v24  ;;  %v2782_v28 = vpop.eup %2781  ;;  %v772_v30 = vxor.u32 2147483648, %v2780_v27  ;;  %v1136_v24 = vshrl.u32 %v1135_v19, 7 }
 0x131   :  { %2666 = vmatpush3.bf16.msra.mxu1 %v2665_v21  ;;  %2538 = vmatprep.mubr.msk.f32.mxu1 %vm2884_vm0, %v2885_v11  ;;  %v769_v31 = vxor.u32 2147483648, %v2782_v28  ;;  %v2395_v21 = vld [vmem:[#allocation3] ss:$0 sm:$0xff] }
 0x132   :  { %2667 = vmatprep.subr.bf16.mxu1 %v2883_v9  ;;  %v878_v33 = vsel %vm876_vm12, %v772_v30, %v2782_v28  ;;  %v773_v38 = vsel %vm771_vm15, %v772_v30, %v2782_v28  ;;  %v2684_v16 = vadd.f32 %v2395_v21, %v2380_v20  ;;  %v3252_v25 = vsub.s32 %v1134_v23, %v1136_v24  ;;  %v1418_v21 = vpop.permute.xlu0 %1417 }
 0x133   :  { %v875_v35 = vsel %vm873_vm13, %v2780_v27, %v769_v31  ;;  %v770_v37 = vsel %vm768_vm14, %v2780_v27, %v769_v31  ;;  %v3255_v31 = vsub.s32 0, %v1136_v24 }
 0x134   :  { %v879_v39 = vsel %vm872_vm1, %v875_v35, %v878_v33  ;;  %v774_v14 = vsel %vm767_vm3, %v770_v37, %v773_v38  ;;  %v2757_v38 = vld [vmem:[%s3432_s5] sm:$0xff]  }
 0x135   :  { %v880_v41 = vsel %vm764_vm2, nan, %v879_v39  ;;  %v775_v15 = vsel %vm764_vm2, nan, %v774_v14  ;;  %v2758_v39 = vld [vmem:[%s3433_s9] sm:$0xff]  }
 0x136   :  { %2539 = vmatmul.mubr.msk.f32.vlgmr.msra.gmra.mrb[4].mxu1 %vm410_vm4, %v880_v41  ;;  %v1412_v41 = vld [vmem:[%s2924_s21 + $0x8] sm:$0xff]  ;;  %s3436_s21 = sld [smem:[#allocation11_spill]] }
 0x137   :  { %2669 = vmatpush3.bf16.msra.mxu1 %v2668_v32  ;;  %2545 = vmatprep.mubr.msk.f32.mxu1 %vm2884_vm0, %v2885_v11 }
 0x138   :  { %2559 = vmatprep.subr.bf16.mxu1 %v2885_v11 }
 0x13a   :  { %2546 = vmatmul.mubr.msk.f32.vlgmr.msra.gmra.mrb[6].mxu1 %vm410_vm4, %v775_v15  ;;  %vm583_vm4 = vcmask 261120   ;;  %v1414_v15 = vmul.f32 -1e+30, %v1412_v41 }
 0x13b   :  { %2563 = vmatprep.mubr.msk.bf16.mxu1 %vm2884_vm0, %v2885_v11  ;;  %2560 = vmatpush3.bf16.msra.mxu1 %v2755_v8 }
 0x13c   :  { %2561 = vmatprep.subr.bf16.mxu1 %v2885_v11 }
 0x13f   :  { %2562 = vmatpush3.bf16.msra.mxu1 %v2756_v10 }
 0x140   :  { %2575 = vmatprep.subr.bf16.mxu1 %v2885_v11 }
 0x1ff   :  { %v480_v45 = vpop.f32.mrb[0].mxu1 }
 0x200   :  { %v2515_v47 = vpop.f32.mrb[1].mxu1 }
 0x203   :  { %v553_v48 = vpop.f32.mrb[2].mxu1 }
 0x204   :  { %v554_v50 = vadd.f32 %v553_v48, %v480_v45  ;;  %v2522_v46 = vpop.f32.mrb[3].mxu1 }
 0x205   :  { %v1130_v46 = vld [vmem:[%s3435_s29 + $0x8] sm:$0xff] }
 0x206   :  { %v564_v51 = vadd.f32 %v2378_v49, %v554_v50  ;;  %v1129_v50 = vld [vmem:[%s3435_s29] sm:$0xff] }
 0x208   :  { %v2379_v52 = vmul.f32 -1.442695, %v564_v51 }
 0x209   :  { %v952_v53 = vpop.f32.mrb[4].mxu1 }
 0x20a   :  { %2783 = vpow2.f32 %v2379_v52  ;;  %v2540_v54 = vpop.f32.mrb[5].mxu1 }
 0x20d   :  { %v1025_v55 = vpop.f32.mrb[6].mxu1 }
 0x20e   :  { %v1026_v58 = vadd.f32 %v1025_v55, %v952_v53  ;;  %v2547_v18 = vpop.f32.mrb[7].mxu1  ;;  %v1409_v55 = vld [vmem:[%s3434_s17 + $0x10] sm:$0xff] }
 0x20f   :  { %v2397_v18 = vld [vmem:[%s3436_s21] ss:$0 sm:$0xff] }
 0x210   :  { %v1036_v59 = vadd.f32 %v2393_v57, %v1026_v58  ;;  %v1410_v57 = vld [vmem:[%s3434_s17 + $0x18] sm:$0xff] }
 0x211   :  { %v2680_v58 = vpack.c.bf16 %v1410_v57, %v1409_v55 }
 0x212   :  { %v2394_v60 = vmul.f32 -1.442695, %v1036_v59 }
 0x214   :  { %v2784_v56 = vpop.eup %2783  ;;  %2785 = vpow2.f32 %v2394_v60 }
 0x215   :  { %v568_v61 = vadd.f32 1.0, %v2784_v56 }
 0x217   :  { %2787 = vrcp.f32 %v568_v61 }
 0x21e   :  { %v2786_v63 = vpop.eup %2785 }
 0x21f   :  { %v1040_v0 = vadd.f32 1.0, %v2786_v63 }
 0x221   :  { %v2788_v1 = vpop.eup %2787  ;;  %2789 = vrcp.f32 %v1040_v0 }
 0x222   :  { %v571_v3 = vmul.f32 %v2788_v1, %v564_v51 }
 0x224   :  { %2532 = vmatmul.mubr.msk.f32.vlgmr.msra.gmra.mrb[0].mxu0 %vm583_vm4, %v571_v3 }
 0x225   :  { %2672 = vmatpush3.bf16.msra.mxu0 %v2671_v2  ;;  %2556 = vmatprep.mubr.msk.f32.mxu0 %vm2884_vm0, %v2885_v11 }
 0x226   :  { %2673 = vmatprep.subr.bf16.mxu0 %v2883_v9  ;;  %v1173_v9 = vpack.c.bf16 %v3243_v12, %v3243_v12 }
 0x228   :  { %2564 = vmatmul.mubr.msk.bf16.vlgmr.msra.gmra.mrb[8].mxu1 %vm583_vm4, %v1173_v9 }
 0x229   :  { %2675 = vmatpush3.bf16.msra.mxu0 %v2674_v5  ;;  %2579 = vmatprep.mubr.msk.bf16.mxu1 %vm2884_vm0, %v2885_v11 }
 0x22a   :  { %2567 = vmatprep.subr.bf16.mxu0 %v2885_v11  ;;  %2576 = vmatpush3.bf16.msra.mxu1 %v2758_v39 }
 0x22b   :  { %v2790_v6 = vpop.eup %2789  ;;  %2577 = vmatprep.subr.bf16.mxu1 %v2885_v11 }
 0x22c   :  { %v1043_v7 = vmul.f32 %v2790_v6, %v1036_v59 }
 0x22e   :  { %2557 = vmatmul.mubr.msk.f32.vlgmr.msra.gmra.mrb[0].mxu0 %vm583_vm4, %v1043_v7  ;;  %2578 = vmatpush3.bf16.msra.mxu1 %v2760_v34 }
 0x22f   :  { %2571 = vmatprep.mubr.msk.bf16.mxu0 %vm2884_vm0, %v2885_v11  ;;  %2568 = vmatpush3.bf16.msra.mxu0 %v2757_v38 }
 0x230   :  { %2569 = vmatprep.subr.bf16.mxu0 %v2885_v11  ;;  %2594 = vmatprep.subr.msk.mxu1 %vm1548_vm5, %v1541_v17 }
 0x233   :  { %2570 = vmatpush3.bf16.msra.mxu0 %v2759_v22 }
 0x234   :  { %2677 = vmatprep.subr.bf16.mxu0 %v2676_v42 }
 0x2fb   :  { %v1234_v44 = vpop.f32.mrb[8].mxu1 }
 0x2fc   :  { %v2565_v45 = vpop.f32.mrb[9].mxu1  ;;  %v1235_v59 = vadd.f32 %v2397_v18, %v1234_v44 }
 0x2fd   :  { %v1237_v47 = vpop.f32.mrb[10].mxu1 }
 0x2fe   :  { %v2566_v48 = vpop.f32.mrb[11].mxu1  ;;  %v1379_v60 = vrot.slane %v1235_v59, %v3252_v25 }
 0x300   :  { %v1380_v56 = vcombine.high %v1379_v60, %v1379_v60  ;;  %v1387_v61 = vrot.slane %v1379_v60, %v3252_v25 }
 0x301   :  { %v1124_v26 = vpop.f32.mrb[0].mxu0 }
 0x302   :  { %v2685_v27 = vadd.f32 %v2684_v16, %v1124_v26  ;;  %v2558_v28 = vpop.f32.mrb[1].mxu0  ;;  %v1394_v36 = vrot.slane %v1380_v56, %v3252_v25  ;;  %v1398_v63 = vrot.slane %v1387_v61, %v3255_v31 }
 0x304   :  { %v1138_v30 = vrot.slane %v2685_v27, %v3252_v25  ;;  %v1402_v4 = vrot.slane %v1394_v36, %v3255_v31  ;;  %v2761_v36 = vld [vmem:[%s3439_s14] sm:$0xff]  }
 0x306   :  { %v1139_v32 = vcombine.high %v1138_v30, %v1138_v30  ;;  %v1146_v33 = vrot.slane %v1138_v30, %v3252_v25 }
 0x308   :  { %v1157_v35 = vrot.slane %v1146_v33, %v3255_v31  ;;  %v1153_v37 = vrot.slane %v1139_v32, %v3252_v25 }
 0x30a   :  { %1163 = vperm.xlu1 %2754, %v1157_v35   ;;  %v1161_v14 = vrot.slane %v1153_v37, %v3255_v31 }
 0x30e   :  { %1167 = vperm.xlu1 %2754, %v1161_v14  }
 0x312   :  { %1422 = vperm.xlu1 %2754, %v1414_v15  }
 0x389   :  { %v1164_v49 = vpop.permute.xlu1 %1163 }
 0x38a   :  { %v3272_v52 = vadd.f32 %v1164_v49, %v1129_v50 }
 0x38d   :  { %v1168_v51 = vpop.permute.xlu1 %1167 }
 0x38e   :  { %v3274_v53 = vadd.f32 %v1168_v51, %v1130_v46 }
 0x390   :  { %v1240_v54 = vpack.c.bf16 %v3274_v53, %v3272_v52 }
 0x391   :  { %v1423_v19 = vpop.permute.xlu1 %1422 }
 0x392   :  { %2572 = vmatmul.mubr.msk.bf16.vlgmr.msra.gmra.mrb[4].mxu0 %vm583_vm4, %v1240_v54  ;;  %2580 = vmatmul.mubr.msk.bf16.vlgmr.msra.gmra.mrb[12].mxu1 %vm583_vm4, %v1240_v54 }
 0x393   :  { %2679 = vmatpush3.bf16.msra.mxu0 %v2676_v42  ;;  %2595 = vmatpush3.msk.msra.mxu1 %vm1548_vm5, %v1541_v17 }
 0x394   :  { %2681 = vmatprep.subr.bf16.mxu0 %v2680_v58  ;;  %2604 = vmatprep.subr.bf16.mxu1 %v2885_v11 }
 0x397   :  { %2683 = vmatpush3.bf16.msra.mxu0 %v2680_v58 }
 0x398   :  { %2599 = vmatprep.subr.mxu0 %v2885_v11 }
 0x465   :  { %v1301_v0 = vpop.f32.mrb[4].mxu0  ;;  %v3289_v1 = vpop.f32.mrb[12].mxu1 }
 0x466   :  { %v1302_v2 = vadd.f32 %v2401_v62, %v1301_v0  ;;  %v2573_v3 = vpop.f32.mrb[5].mxu0  ;;  %v2581_v29 = vpop.f32.mrb[13].mxu1 }
 0x467   :  { %v1304_v5 = vpop.f32.mrb[6].mxu0  ;;  %v3292_v6 = vpop.f32.mrb[14].mxu1 }
 0x468   :  { %v1405_v7 = vmul.f32 %v1398_v63, %v1302_v2  ;;  %v1305_v8 = vadd.f32 %v2401_v62, %v1304_v5  ;;  %v2574_v10 = vpop.f32.mrb[7].mxu0  ;;  %v2582_v9 = vpop.f32.mrb[15].mxu1  ;;  %v2762_v62 = vld [vmem:[%s3439_s14 + $0x8] sm:$0xff]   ;;  %v2405_v63 = vld [vmem:[%s3440_s19] ss:$0 sm:$0xff] }
 0x469   :  { %v1369_v0 = vadd.f32 %v2405_v63, %v3292_v6  ;;  %v1366_v2 = vadd.f32 %v2405_v63, %v3289_v1  ;;  %v2765_v63 = vld [vmem:[%s3445_s27] sm:$0xff]  }
 0x46a   :  { %v1406_v13 = vmul.f32 %v1402_v4, %v1305_v8  ;;  %2591 = vmatprep.mubr.msk.f32.mxu0 %vm583_vm4, %v1405_v7 }
 0x46c   :  { %2592 = vmatmul.mubr.msk.f32.vlgmr.msra.gmra.mrb[2].mxu0 %vm583_vm4, %v1406_v13 }
 0x46d   :  { %2601 = vmatprep.mubr.msk.f32.mxu0 %vm2884_vm0, %v2885_v11  ;;  %2600 = vmatpush3.msk.msra.mxu0 %vm1548_vm5, %v1541_v17 }
 0x46e   :  { %2612 = vmatprep.subr.bf16.mxu0 %v2885_v11 }
 0x53f   :  { %v2593_v20 = vpop.f32.mrb[2].mxu0 }
 0x540   :  { %v1503_v23 = vadd.f32 %v2593_v20, %v1423_v19  ;;  %v1497_v24 = vpop.f32.mrb[3].mxu0 }
 0x541   :  { %v1498_v16 = vadd.f32 %v1497_v24, %v1418_v21 }
 0x542   :  { %v1514_v26 = vsel %vm1506_vm6, %v1503_v23, -inf }
 0x543   :  { %v1515_v27 = vrot.slane %v1514_v26, 4  ;;  %v1507_v28 = vsel %vm1506_vm6, %v1498_v16, -inf }
 0x544   :  { %v1508_v30 = vrot.slane %v1507_v28, 4 }
 0x545   :  { %v1516_v32 = vmax.f32 %v1514_v26, %v1515_v27 }
 0x546   :  { %v1509_v33 = vmax.f32 %v1507_v28, %v1508_v30 }
 0x547   :  { %v1517_v35 = vrot.slane %v1516_v32, 2 }
 0x548   :  { %v1510_v37 = vrot.slane %v1509_v33, 2 }
 0x549   :  { %v1518_v38 = vmax.f32 %v1516_v32, %v1517_v35 }
 0x54a   :  { %v1511_v39 = vmax.f32 %v1509_v33, %v1510_v37 }
 0x54b   :  { %v1519_v41 = vrot.slane %v1518_v38, 1 }
 0x54c   :  { %v1512_v14 = vrot.slane %v1511_v39, 1 }
 0x54d   :  { %v1520_v15 = vmax.f32 %v1518_v38, %v1519_v41 }
 0x54e   :  { %v1513_v22 = vmax.f32 %v1511_v39, %v1512_v14 }
 0x54f   :  { %v1522_v34 = vsub.f32 %v1503_v23, %v1520_v15 }
 0x550   :  { %v1521_v43 = vsub.f32 %v1498_v16, %v1513_v22  ;;  %v2416_v22 = vld [vmem:[%s3441_s24] ss:$0 sm:$0xff] }
 0x551   :  { %v1525_v40 = vmul.f32 1.442695, %v1522_v34 }
 0x552   :  { %v1523_v42 = vmul.f32 1.442695, %v1521_v43 }
 0x553   :  { %2791 = vpow2.f32 %v1525_v40 }
 0x554   :  { %2793 = vpow2.f32 %v1523_v42 }
 0x55d   :  { %v2792_v44 = vpop.eup %2791 }
 0x55e   :  { %v2794_v45 = vpop.eup %2793  ;;  %v1534_v47 = vsel %vm1506_vm6, %v2792_v44, 0.0 }
 0x55f   :  { %v1535_v48 = vrot.slane %v1534_v47, 4  ;;  %v1527_v49 = vsel %vm1506_vm6, %v2794_v45, 0.0  ;;  %2596 = vmatprep.mubr.msk.f32.mxu1 %vm1506_vm6, %v2794_v45 }
 0x560   :  { %v1528_v50 = vrot.slane %v1527_v49, 4  ;;  %2597 = vmatmul.mubr.msk.f32.vlgmr.msra.gmra.mrb[16].mxu1 %vm1506_vm6, %v2792_v44 }
 0x561   :  { %v1536_v46 = vadd.f32 %v1535_v48, %v1534_v47  ;;  %2608 = vmatprep.mubr.msk.bf16.mxu1 %vm2884_vm0, %v2885_v11  ;;  %2605 = vmatpush3.bf16.msra.mxu1 %v2761_v36 }
 0x562   :  { %v1529_v51 = vadd.f32 %v1528_v50, %v1527_v49  ;;  %2606 = vmatprep.subr.bf16.mxu1 %v2885_v11 }
 0x563   :  { %v1537_v54 = vrot.slane %v1536_v46, 2 }
 0x564   :  { %v1530_v55 = vrot.slane %v1529_v51, 2 }
 0x565   :  { %v1538_v57 = vadd.f32 %v1537_v54, %v1536_v46  ;;  %2607 = vmatpush3.bf16.msra.mxu1 %v2762_v62  ;;  %v2763_v54 = vld [vmem:[%s3442_s6] sm:$0xff]  }
 0x566   :  { %v1531_v58 = vadd.f32 %v1530_v55, %v1529_v51  ;;  %2620 = vmatprep.subr.bf16.mxu1 %v2885_v11  ;;  %v2764_v55 = vld [vmem:[%s3442_s6 + $0x8] sm:$0xff]  }
 0x567   :  { %v1539_v18 = vrot.slane %v1538_v57, 1 }
 0x568   :  { %v1532_v59 = vrot.slane %v1531_v58, 1 }
 0x569   :  { %v1540_v60 = vadd.f32 %v1539_v18, %v1538_v57 }
 0x56a   :  { %v1533_v56 = vadd.f32 %v1532_v59, %v1531_v58  ;;  %v2420_v59 = vld [vmem:[%s3443_s12] ss:$0 sm:$0xff] }
 0x56c   :  { %v1646_v61 = vsel %vm1645_vm7, %v1540_v60, %v1533_v56  ;;  %v2421_v56 = vld [vmem:[%s3444_s20] ss:$0 sm:$0xff] }
 0x56d   :  { %2602 = vmatmul.mubr.msk.f32.vlgmr.msra.gmra.mrb[8].mxu0 %vm1506_vm6, %v1646_v61 }
 0x56e   :  { %2616 = vmatprep.mubr.msk.bf16.mxu0 %vm2884_vm0, %v2885_v11  ;;  %2613 = vmatpush3.bf16.msra.mxu0 %v2763_v54 }
 0x56f   :  { %2614 = vmatprep.subr.bf16.mxu0 %v2885_v11 }
 0x572   :  { %2615 = vmatpush3.bf16.msra.mxu0 %v2764_v55 }
 0x573   :  { %2632 = vmatprep.subr.bf16.mxu0 %v2885_v11 }
 0x633   :  { %v2598_v3 = vpop.f32.mrb[16].mxu1 }
 0x634   :  { %v1628_v29 = vmul.f32 %v2598_v3, %v1369_v0  ;;  %v1618_v4 = vpop.f32.mrb[17].mxu1  ;;  %v2766_v0 = vld [vmem:[%s3445_s27 + $0x8] sm:$0xff]   ;;  %v2768_v3 = vld [vmem:[%s3445_s27 + $0x18] sm:$0xff]  }
 0x635   :  { %v1627_v5 = vmul.f32 %v1618_v4, %v1366_v2  ;;  %v2767_v2 = vld [vmem:[%s3445_s27 + $0x10] sm:$0xff]  }
 0x636   :  { %v1636_v7 = vsel %vm583_vm4, %v1628_v29, 0.0  ;;  %v2422_v29 = vld [vmem:[%s3446_s4] ss:$0 sm:$0xff] }
 0x637   :  { %v1629_v8 = vsel %vm583_vm4, %v1627_v5, 0.0  ;;  %v1637_v10 = vrot.slane %v1636_v7, 4 }
 0x638   :  { %v1630_v9 = vrot.slane %v1629_v8, 4 }
 0x639   :  { %v1638_v17 = vadd.f32 %v1637_v10, %v1636_v7 }
 0x63a   :  { %v1631_v13 = vadd.f32 %v1630_v9, %v1629_v8 }
 0x63b   :  { %v1639_v20 = vrot.slane %v1638_v17, 2 }
 0x63c   :  { %v1632_v19 = vrot.slane %v1631_v13, 2 }
 0x63d   :  { %v1640_v24 = vadd.f32 %v1639_v20, %v1638_v17 }
 0x63e   :  { %v1633_v6 = vadd.f32 %v1632_v19, %v1631_v13 }
 0x63f   :  { %v1641_v16 = vrot.slane %v1640_v24, 1 }
 0x640   :  { %v1715_v21 = vpop.f32.mrb[8].mxu0  ;;  %v1634_v1 = vrot.slane %v1633_v6, 1 }
 0x641   :  { %2795 = vrcp.f32 %v1715_v21  ;;  %v2603_v23 = vpop.f32.mrb[9].mxu0  ;;  %v1642_v28 = vadd.f32 %v1641_v16, %v1640_v24 }
 0x642   :  { %v1635_v26 = vadd.f32 %v1634_v1, %v1633_v6  ;;  %v2426_v23 = vld [vmem:[%s3447_s13] ss:$0 sm:$0xff] }
 0x64b   :  { %v2796_v27 = vpop.eup %2795 }
 0x64c   :  { %v1721_v30 = vrot.slane %v2796_v27, 1  ;;  %v1724_v32 = vmul.f32 %v2796_v27, %v1635_v26 }
 0x64e   :  { %v1725_v33 = vmul.f32 %v1721_v30, %v1642_v28  ;;  %v1726_v35 = vpack.c.bf16 %v1724_v32, %v1724_v32 }
 0x650   :  { %v1727_v37 = vpack.c.bf16 %v1725_v33, %v1725_v33  ;;  %v1741_v39 = vunpack.c.l.b16 %v1726_v35 }
 0x652   :  { %v1742_v38 = vunpack.c.l.b16 %v1727_v37 }
 0x654   :  { %v1743_v41 = vrot.slane %v1742_v38, 7 }
 0x656   :  { %v1744_v14 = vsel %vm1645_vm7, %v1743_v41, %v1741_v39 }
 0x657   :  { %v1745_v15 = vpack.c.b16 %v1744_v14, %v1744_v14 }
 0x659   :  { %2609 = vmatmul.mubr.msk.bf16.vlgmr.msra.gmra.mrb[20].mxu1 %vm583_vm4, %v1745_v15  ;;  %v2432_v15 = vld [vmem:[%s3448_s22] ss:$0 sm:$0xff] }
 0x65a   :  { %2628 = vmatprep.mubr.msk.bf16.mxu1 %vm2884_vm0, %v2885_v11  ;;  %2621 = vmatpush3.bf16.msra.mxu1 %v2765_v63 }
 0x65b   :  { %2622 = vmatprep.subr.bf16.mxu1 %v2885_v11 }
 0x65e   :  { %2623 = vmatpush3.bf16.msra.mxu1 %v2766_v0 }
 0x65f   :  { %2624 = vmatprep.subr.bf16.mxu1 %v2885_v11 }
 0x662   :  { %2625 = vmatpush3.bf16.msra.mxu1 %v2767_v2 }
 0x663   :  { %2626 = vmatprep.subr.bf16.mxu1 %v2885_v11 }
 0x666   :  { %2627 = vmatpush3.bf16.msra.mxu1 %v2768_v3 }
 0x72c   :  { %v1795_v34 = vpop.f32.mrb[20].mxu1 }
 0x72d   :  { %v1796_v43 = vadd.f32 %v2416_v22, %v1795_v34  ;;  %v2610_v40 = vpop.f32.mrb[21].mxu1  ;;  %v2433_v34 = vld [vmem:[%s3449_s26] ss:$0 sm:$0xff] }
 0x72e   :  { %v1798_v42 = vpop.f32.mrb[22].mxu1 }
 0x72f   :  { %v2611_v44 = vpop.f32.mrb[23].mxu1  ;;  %v1801_v45 = vadd.f32 %v1796_v43, %v3243_v12 }
 0x731   :  { %v1803_v47 = vsel %vm1802_vm8, %v1801_v45, 0.0 }
 0x732   :  { %1804 = vadd.xlane.f32.xlu0 %v1803_v47 }
 0x7bf   :  { %v1805_v48 = vpop.xlane.xlu0 %1804 }
 0x7c0   :  { %v1807_v49 = vmul.f32 0.03125, %v1805_v48 }
 0x7c2   :  { %v1808_v50 = vsub.f32 %v1801_v45, %v1807_v49 }
 0x7c4   :  { %v1809_v46 = vmul.f32 %v1808_v50, %v1808_v50 }
 0x7c6   :  { %v1810_v51 = vsel %vm1802_vm8, %v1809_v46, 0.0 }
 0x7c7   :  { %1811 = vadd.xlane.f32.xlu1 %v1810_v51 }
 0x854   :  { %v1812_v12 = vpop.xlane.xlu1 %1811 }
 0x855   :  { %v1813_v57 = vmul.f32 0.03125, %v1812_v12 }
 0x857   :  { %v1814_v58 = vadd.f32 1e-05, %v1813_v57 }
 0x859   :  { %2797 = vrsqrt.f32 %v1814_v58 }
 0x863   :  { %v2798_v18 = vpop.eup %2797 }
 0x864   :  { %v1816_v60 = vmul.f32 %v2798_v18, %v1808_v50 }
 0x866   :  { %v1824_v61 = vmul.f32 %v2420_v59, %v1816_v60 }
 0x868   :  { %v1832_v36 = vadd.f32 %v2421_v56, %v1824_v61  ;;  %v2770_v56 = vld [vmem:[%s3450_s25 + $0x8] sm:$0xff]  }
 0x86a   :  { %v1833_v62 = vpack.c.bf16 %v1832_v36, %v1832_v36 }
 0x86c   :  { %2617 = vmatmul.mubr.msk.bf16.vlgmr.msra.gmra.mrb[12].mxu0 %vm583_vm4, %v1833_v62 }
 0x86d   :  { %2636 = vmatprep.mubr.msk.bf16.mxu0 %vm2884_vm0, %v2885_v11 }
 0x93f   :  { %v1894_v4 = vpop.f32.mrb[12].mxu0 }
 0x940   :  { %v1895_v5 = vadd.f32 %v2422_v29, %v1894_v4  ;;  %v2618_v7 = vpop.f32.mrb[13].mxu0  ;;  %v2434_v29 = vld [vmem:[%s3451_s1] ss:$0 sm:$0xff] }
 0x941   :  { %v1897_v8 = vpop.f32.mrb[14].mxu0 }
 0x942   :  { %v1901_v10 = vmul.f32 0.70710677, %v1895_v5  ;;  %v2619_v9 = vpop.f32.mrb[15].mxu0  ;;  %v1900_v17 = vmul.f32 0.5, %v1895_v5 }
 0x944   :  { %2799 = verf.f32 %v1901_v10  ;;  %v2435_v10 = vld [vmem:[%s3452_s2] ss:$0 sm:$0xff] }
 0x94e   :  { %v2800_v13 = vpop.eup %2799 }
 0x94f   :  { %v1903_v19 = vadd.f32 1.0, %v2800_v13 }
 0x951   :  { %v1904_v20 = vmul.f32 %v1903_v19, %v1900_v17 }
 0x953   :  { %v1905_v21 = vpack.c.bf16 %v1904_v20, %v1904_v20  ;;  %v2771_v20 = vld [vmem:[%s3102_s28] sm:$0xff]  }
 0x955   :  { %2629 = vmatmul.mubr.msk.bf16.vlgmr.msra.gmra.mrb[24].mxu1 %vm1945_vm9, %v1905_v21  ;;  %v2772_v21 = vld [vmem:[%s3102_s28 + $0x8] sm:$0xff]  }
 0xa28   :  { %v1983_v6 = vpop.f32.mrb[24].mxu1 }
 0xa29   :  { %v1984_v24 = vadd.f32 %v2426_v23, %v1983_v6  ;;  %v2630_v1 = vpop.f32.mrb[25].mxu1  ;;  %v2773_v23 = vld [vmem:[%s3102_s28 + $0x10] sm:$0xff]   ;;  %v2774_v6 = vld [vmem:[%s3102_s28 + $0x18] sm:$0xff]   ;;  %s3454_s28 = sld [smem:[#allocation24_spill]] }
 0xa2a   :  { %v1986_v16 = vpop.f32.mrb[26].mxu1 }
 0xa2b   :  { %v2631_v26 = vpop.f32.mrb[27].mxu1  ;;  %v1989_v27 = vadd.f32 %v1984_v24, %v1832_v36  ;;  %v2436_v24 = vld [vmem:[%s3453_s30] ss:$0 sm:$0xff] }
 0xa2d   :  { %v1990_v28 = vsel %vm1802_vm8, %v1989_v27, 0.0 }
 0xa2e   :  { %1991 = vadd.xlane.f32.xlu0 %v1990_v28 }
 0xabb   :  { %v1992_v30 = vpop.xlane.xlu0 %1991 }
 0xabc   :  { %v1993_v32 = vmul.f32 0.03125, %v1992_v30 }
 0xabe   :  { %v1994_v33 = vsub.f32 %v1989_v27, %v1993_v32 }
 0xac0   :  { %v1995_v35 = vmul.f32 %v1994_v33, %v1994_v33 }
 0xac2   :  { %v1996_v37 = vsel %vm1802_vm8, %v1995_v35, 0.0 }
 0xac3   :  { %1997 = vadd.xlane.f32.xlu0 %v1996_v37 }
 0xb50   :  { %v1998_v38 = vpop.xlane.xlu0 %1997 }
 0xb51   :  { %v1999_v39 = vmul.f32 0.03125, %v1998_v38 }
 0xb53   :  { %v2000_v41 = vadd.f32 1e-05, %v1999_v39 }
 0xb55   :  { %2801 = vrsqrt.f32 %v2000_v41 }
 0xb5f   :  { %v2802_v14 = vpop.eup %2801 }
 0xb60   :  { %v2002_v22 = vmul.f32 %v2802_v14, %v1994_v33 }
 0xb62   :  { %v2010_v43 = vmul.f32 %v2432_v15, %v2002_v22 }
 0xb64   :  { %v2018_v40 = vadd.f32 %v2433_v34, %v2010_v43  ;;  %v2440_v34 = vld [vmem:[%s3107_s7] ss:$0 sm:$0xff]  ;;  %s3455_s7 = sld [smem:[#allocation25_spill]] }
 0xb66   :  { %v2026_v42 = vrot.slane %v2018_v40, %v3252_v25 }
 0xb68   :  { %v2034_v44 = vrot.slane %v2026_v42, %v3252_v25  ;;  %v2027_v45 = vcombine.high %v2026_v42, %v2026_v42 }
 0xb6a   :  { %v2045_v47 = vrot.slane %v2034_v44, %v3255_v31  ;;  %v2041_v48 = vrot.slane %v2027_v45, %v3252_v25 }
 0xb6c   :  { %v2052_v49 = vadd.f32 %v2045_v47, %v3272_v52  ;;  %v2049_v50 = vrot.slane %v2041_v48, %v3255_v31 }
 0xb6e   :  { %v2054_v46 = vsel %vm583_vm4, %v2052_v49, 0.0  ;;  %v2053_v51 = vadd.f32 %v2049_v50, %v3274_v53  ;;  %v2769_v53 = vld [vmem:[%s3450_s25] sm:$0xff]  }
 0xb6f   :  { %2055 = vadd.xlane.f32.xlu1 %v2054_v46  ;;  %2633 = vmatpush3.bf16.msra.mxu0 %v2769_v53 }
 0xb70   :  { %v2057_v54 = vsel %vm583_vm4, %v2053_v51, 0.0  ;;  %2634 = vmatprep.subr.bf16.mxu0 %v2885_v11 }
 0xb71   :  { %2058 = vadd.xlane.f32.xlu0 %v2057_v54 }
 0xb73   :  { %2635 = vmatpush3.bf16.msra.mxu0 %v2770_v56 }
 0xb74   :  { %2640 = vmatprep.subr.bf16.mxu0 %v2885_v11 }
 0xbfc   :  { %v2056_v55 = vpop.xlane.xlu1 %2055 }
 0xbfd   :  { %v2060_v12 = vmul.f32 0.03125, %v2056_v55 }
 0xbfe   :  { %v2059_v57 = vpop.xlane.xlu0 %2058 }
 0xbff   :  { %v2062_v58 = vsub.f32 %v2052_v49, %v2060_v12  ;;  %v2061_v18 = vmul.f32 0.03125, %v2059_v57 }
 0xc01   :  { %v2063_v25 = vsub.f32 %v2053_v51, %v2061_v18  ;;  %v2064_v59 = vmul.f32 %v2062_v58, %v2062_v58 }
 0xc03   :  { %v2066_v52 = vsel %vm583_vm4, %v2064_v59, 0.0  ;;  %v2065_v31 = vmul.f32 %v2063_v25, %v2063_v25 }
 0xc04   :  { %2067 = vadd.xlane.f32.xlu1 %v2066_v52 }
 0xc05   :  { %v2069_v60 = vsel %vm583_vm4, %v2065_v31, 0.0 }
 0xc06   :  { %2070 = vadd.xlane.f32.xlu0 %v2069_v60 }
 0xc91   :  { %v2068_v61 = vpop.xlane.xlu1 %2067 }
 0xc92   :  { %v2072_v36 = vmul.f32 0.03125, %v2068_v61 }
 0xc93   :  { %v2071_v62 = vpop.xlane.xlu0 %2070 }
 0xc94   :  { %v2074_v63 = vadd.f32 1e-05, %v2072_v36  ;;  %v2073_v0 = vmul.f32 0.03125, %v2071_v62 }
 0xc96   :  { %2803 = vrsqrt.f32 %v2074_v63  ;;  %v2075_v2 = vadd.f32 1e-05, %v2073_v0  ;;  %v2446_v63 = vld [vmem:[%s3454_s28] ss:$0 sm:$0xff] }
 0xc98   :  { %2805 = vrsqrt.f32 %v2075_v2 }
 0xca0   :  { %v2804_v3 = vpop.eup %2803 }
 0xca1   :  { %v2078_v4 = vmul.f32 %v2804_v3, %v2062_v58  ;;  %v2447_v3 = vld [vmem:[%s3455_s7] ss:$0 sm:$0xff] }
 0xca2   :  { %v2806_v5 = vpop.eup %2805 }
 0xca3   :  { %v2087_v7 = vmul.f32 %v2434_v29, %v2078_v4  ;;  %v2079_v8 = vmul.f32 %v2806_v5, %v2063_v25 }
 0xca5   :  { %v2088_v9 = vmul.f32 %v2434_v29, %v2079_v8  ;;  %v2096_v13 = vadd.f32 %v2435_v10, %v2087_v7 }
 0xca7   :  { %v2097_v17 = vadd.f32 %v2435_v10, %v2088_v9 }
 0xca9   :  { %v2098_v19 = vpack.c.bf16 %v2097_v17, %v2096_v13 }
 0xcab   :  { %2637 = vmatmul.mubr.msk.bf16.vlgmr.msra.gmra.mrb[16].mxu0 %vm583_vm4, %v2098_v19 }
 0xcac   :  { %2648 = vmatprep.mubr.msk.bf16.mxu0 %vm2884_vm0, %v2885_v11  ;;  %2641 = vmatpush3.bf16.msra.mxu0 %v2771_v20 }
 0xcad   :  { %2642 = vmatprep.subr.bf16.mxu0 %v2885_v11 }
 0xcb0   :  { %2643 = vmatpush3.bf16.msra.mxu0 %v2772_v21 }
 0xcb1   :  { %2644 = vmatprep.subr.bf16.mxu0 %v2885_v11 }
 0xcb4   :  { %2645 = vmatpush3.bf16.msra.mxu0 %v2773_v23 }
 0xcb5   :  { %2646 = vmatprep.subr.bf16.mxu0 %v2885_v11 }
 0xcb8   :  { %2647 = vmatpush3.bf16.msra.mxu0 %v2774_v6 }
 0xd7e   :  { %v2159_v1 = vpop.f32.mrb[16].mxu0 }
 0xd7f   :  { %v2160_v16 = vadd.f32 %v2436_v24, %v2159_v1  ;;  %v2638_v26 = vpop.f32.mrb[17].mxu0 }
 0xd80   :  { %v2162_v27 = vpop.f32.mrb[18].mxu0 }
 0xd81   :  { %v2168_v28 = vmul.f32 0.70710677, %v2160_v16  ;;  %v2163_v30 = vadd.f32 %v2436_v24, %v2162_v27  ;;  %v2639_v32 = vpop.f32.mrb[19].mxu0  ;;  %v2166_v39 = vmul.f32 0.5, %v2160_v16 }
 0xd83   :  { %2807 = verf.f32 %v2168_v28  ;;  %v2169_v33 = vmul.f32 0.70710677, %v2163_v30  ;;  %v2167_v41 = vmul.f32 0.5, %v2163_v30 }
 0xd85   :  { %2809 = verf.f32 %v2169_v33 }
 0xd8d   :  { %v2808_v35 = vpop.eup %2807 }
 0xd8e   :  { %v2172_v37 = vadd.f32 1.0, %v2808_v35 }
 0xd8f   :  { %v2810_v38 = vpop.eup %2809 }
 0xd90   :  { %v2173_v14 = vadd.f32 1.0, %v2810_v38  ;;  %v2174_v11 = vmul.f32 %v2172_v37, %v2166_v39 }
 0xd92   :  { %v2175_v15 = vmul.f32 %v2173_v14, %v2167_v41 }
 0xd94   :  { %v2176_v22 = vpack.c.bf16 %v2175_v15, %v2174_v11 }
 0xd96   :  { %2649 = vmatmul.mubr.msk.bf16.vlgmr.msra.gmra.mrb[20].mxu0 %vm1945_vm9, %v2176_v22 }
 0xe69   :  { %v2253_v43 = vpop.f32.mrb[20].mxu0 }
 0xe6a   :  { %v2254_v40 = vadd.f32 %v2440_v34, %v2253_v43  ;;  %v2650_v42 = vpop.f32.mrb[21].mxu0 }
 0xe6b   :  { %v2256_v44 = vpop.f32.mrb[22].mxu0 }
 0xe6c   :  { %v2257_v45 = vadd.f32 %v2440_v34, %v2256_v44  ;;  %v2651_v47 = vpop.f32.mrb[23].mxu0  ;;  %v2260_v48 = vadd.f32 %v2254_v40, %v2096_v13 }
 0xe6e   :  { %v2262_v49 = vsel %vm583_vm4, %v2260_v48, 0.0  ;;  %v2261_v50 = vadd.f32 %v2257_v45, %v2097_v17 }
 0xe6f   :  { %2263 = vadd.xlane.f32.xlu1 %v2262_v49 }
 0xe70   :  { %v2265_v46 = vsel %vm583_vm4, %v2261_v50, 0.0 }
 0xe71   :  { %2266 = vadd.xlane.f32.xlu0 %v2265_v46 }
 0xefc   :  { %v2264_v51 = vpop.xlane.xlu1 %2263 }
 0xefd   :  { %v2268_v54 = vmul.f32 0.03125, %v2264_v51 }
 0xefe   :  { %v2267_v55 = vpop.xlane.xlu0 %2266 }
 0xeff   :  { %v2270_v12 = vsub.f32 %v2260_v48, %v2268_v54  ;;  %v2269_v57 = vmul.f32 0.03125, %v2267_v55 }
 0xf01   :  { %v2271_v58 = vsub.f32 %v2261_v50, %v2269_v57  ;;  %v2272_v18 = vmul.f32 %v2270_v12, %v2270_v12 }
 0xf03   :  { %v2274_v25 = vsel %vm583_vm4, %v2272_v18, 0.0  ;;  %v2273_v59 = vmul.f32 %v2271_v58, %v2271_v58 }
 0xf04   :  { %2275 = vadd.xlane.f32.xlu1 %v2274_v25 }
 0xf05   :  { %v2277_v52 = vsel %vm583_vm4, %v2273_v59, 0.0 }
 0xf06   :  { %2278 = vadd.xlane.f32.xlu0 %v2277_v52 }
 0xf91   :  { %v2276_v31 = vpop.xlane.xlu1 %2275 }
 0xf92   :  { %v2280_v60 = vmul.f32 0.03125, %v2276_v31 }
 0xf93   :  { %v2279_v53 = vpop.xlane.xlu0 %2278 }
 0xf94   :  { %v2282_v56 = vadd.f32 1e-05, %v2280_v60  ;;  %v2281_v61 = vmul.f32 0.03125, %v2279_v53 }
 0xf96   :  { %2811 = vrsqrt.f32 %v2282_v56  ;;  %v2283_v36 = vadd.f32 1e-05, %v2281_v61 }
 0xf98   :  { %2813 = vrsqrt.f32 %v2283_v36 }
 0xfa0   :  { %v2812_v62 = vpop.eup %2811 }
 0xfa1   :  { %v2286_v0 = vmul.f32 %v2812_v62, %v2270_v12 }
 0xfa2   :  { %v2814_v2 = vpop.eup %2813 }
 0xfa3   :  { %v2287_v29 = vmul.f32 %v2814_v2, %v2271_v58  ;;  %v2295_v4 = vmul.f32 %v2446_v63, %v2286_v0 }
 0xfa5   :  { %v2296_v5 = vmul.f32 %v2446_v63, %v2287_v29  ;;  %v2304_v7 = vadd.f32 %v2447_v3, %v2295_v4 }
 0xfa7   :  { %v2305_v8 = vadd.f32 %v2447_v3, %v2296_v5  ;;  %2306 = vst.msk [vmem:[#allocation4] sm:$0xff] %vm583_vm4, %v2304_v7 }
 0xfa9   :  { %2307 = vst.msk [vmem:[#allocation4 + $0x8] sm:$0xff] %vm583_vm4, %v2305_v8 }
 0xfaa   :  { %2826 = shalt.err (!%p2823_p4)
}
 0xfab   :  { %s2827_s15 = scalar_lea.hbm %s3112_s16, 256 }
 0xfac   :  { %p2828_p5 = scmp.ne.s32.totalorder %s3112_s16, %s2827_s15  ;;  %p2831_p6 = scmp.lt.u32.totalorder %s2827_s15, %s3112_s16 }
 0xfae   :  { %p2833_p7 = pnand %p2831_p6, %p2828_p5 }
 0xfb0   :  { %2836 = shalt.err (!%p2833_p7)
}
 0xfb1   :  { %s2894_s18 = smov 128   ;;  %s2895_s0 = smov 8  }
 0xfb2   :  { %2319 = dma.vmem_to_hbm [thread:$0]  %s2314_s11, 256, %s3112_s16, [#allocation5], %s2894_s18, %s2894_s18, %s2895_s0  }
 0xfb3   :  { %2837 = dma.done.wait [#allocation5], 256  }
 0xfb4   :  { %2838 = vsyncadd [#allocation5], 4294967040 }
 0xfb5   :  { %2323 = vsyncpa [#allocation5], 1 }

</bundles_post_ra>
